<compile_context>
chip_gen: v6e
topology: v6e:2x2x1
jax: 0.10.0
libtpu: 0.0.40
codegen_flags: <defaults>
</compile_context>

<pallas_src>
import jax
import jax.numpy as jnp
from jax.experimental import pallas as pl
from jax.experimental.pallas import tpu as pltpu

INPUT_DIM = 120
OUTPUT_DIM = 256
H1 = INPUT_DIM * 3          # 360
H2 = H1 // 2                # 180
H3 = H2 // 4                # 45
H4 = 32                     # hidden_size4

LAYER_DIMS = [
    (INPUT_DIM, H1),
    (H1, H2),
    (H2, H3),
    (H3, H4),
    (H4, H4),
    (H4, OUTPUT_DIM),
]


def _round_up(x, m):
    return (x + m - 1) // m * m


def _cdiv(a, b):
    return (a + b - 1) // b


# Lane-dense padded dims: input stays 120, every later dim rounded up to 128.
_PAD_CHAIN = [INPUT_DIM] + [_round_up(d, 128) for d in (H1, H2, H3, H4, H4, OUTPUT_DIM)]
PADDED_DIMS = list(zip(_PAD_CHAIN[:-1], _PAD_CHAIN[1:]))
# -> [(120, 384), (384, 256), (256, 128), (128, 128), (128, 128), (128, 256)]


def _mlp_kernel(x_ref,
                w1_ref, b1_ref,
                w2_ref, b2_ref,
                w3_ref, b3_ref,
                w4_ref, b4_ref,
                w5_ref, b5_ref,
                w6_ref, b6_ref,
                o_ref):
    """Fused MLP: 6 bf16 MXU matmuls (f32 accumulation), ReLU between layers 1..5."""
    h = x_ref[...]                               # (tile, 120) bf16

    def layer(h, w_ref, b_ref, relu):
        # bf16 x bf16 MXU matmul, f32 accumulation; bias-add (and ReLU) in f32.
        y = jnp.dot(h, w_ref[...], preferred_element_type=jnp.float32) + b_ref[...]
        if relu:
            # Narrow to bf16 right after the ReLU: halves inter-layer
            # activation width in vregs/VMEM, numerically identical to casting
            # at the next layer's MXU input.
            y = jnp.maximum(y, 0.0).astype(jnp.bfloat16)
        return y

    h = layer(h, w1_ref, b1_ref, True)
    h = layer(h, w2_ref, b2_ref, True)
    h = layer(h, w3_ref, b3_ref, True)
    h = layer(h, w4_ref, b4_ref, True)
    h = layer(h, w5_ref, b5_ref, True)
    h = layer(h, w6_ref, b6_ref, False)          # final layer stays f32

    o_ref[...] = h.astype(o_ref.dtype)


def init_params(key):
    """PyTorch nn.Linear-style init: W:(in,out), b:(1,out), uniform(+-1/sqrt(fan_in)), f32."""
    params = []
    for (fan_in, fan_out) in LAYER_DIMS:
        key, kw, kb = jax.random.split(key, 3)
        bound = 1.0 / jnp.sqrt(jnp.float32(fan_in))
        w = jax.random.uniform(kw, (fan_in, fan_out), jnp.float32, -bound, bound)
        b = jax.random.uniform(kb, (1, fan_out), jnp.float32, -bound, bound)
        params.append((w, b))
    return params


def prepare_params(params):
    """Zero-pad to lane-dense shapes and cast weights to bf16 (done once, at 'init')."""
    prepared = []
    for (w, b), (pin, pout) in zip(params, PADDED_DIMS):
        fin, fout = w.shape
        w_p = jnp.zeros((pin, pout), jnp.float32).at[:fin, :fout].set(w)
        b_p = jnp.zeros((1, pout), jnp.float32).at[:, :fout].set(b)
        prepared.append((w_p.astype(jnp.bfloat16), b_p))   # bias stays f32
    return prepared


def _dual_core():
    """True on chips with two TensorCores per chip (v7x)."""
    try:
        kind = jax.devices()[0].device_kind.lower()
    except Exception:
        return False
    return ("v7" in kind) or ("tpu7" in kind)


def _choose_tile(batch, batch_tile, dual_core):
    """Row-tile policy: big tiles, no forced split on 1-TC chips, >=4 steps on v7x."""
    rows8 = _round_up(batch, 8)
    cap = max(8, (batch_tile // 8) * 8)
    if dual_core and rows8 >= 4 * 64:
        min_tiles = 4          # >= 2 grid steps per TensorCore on v7x
    elif dual_core and rows8 >= 2 * 64:
        min_tiles = 2
    else:
        min_tiles = 1          # single-TC chips: never force a split
    num_tiles = max(_cdiv(rows8, cap), min_tiles)
    if num_tiles == 1:
        # Single grid step: use the exact batch as a full-dim block (no masked
        # rows at all, even when batch is not a multiple of 8).
        return batch
    return _round_up(_cdiv(rows8, num_tiles), 8)


def physic_set_forward(x, prepared_params, *, batch_tile=1024, out_dtype=jnp.float32):
    """x: (batch, INPUT_DIM) float.  prepared_params: output of prepare_params()."""
    assert x.ndim == 2 and x.shape[1] == INPUT_DIM, x.shape
    batch = x.shape[0]
    assert batch >= 1

    # x is only consumed at bf16 precision at the MXU: stream it as bf16
    # (halves x-side HBM traffic, no additional precision loss).
    x = x.astype(jnp.bfloat16)

    tile = _choose_tile(batch, batch_tile, _dual_core())
    grid = _cdiv(batch, tile)

    flat_params = []
    for w, b in prepared_params:
        flat_params.extend([w, b])

    x_spec = pl.BlockSpec((tile, INPUT_DIM), lambda i: (i, 0))
    o_spec = pl.BlockSpec((tile, OUTPUT_DIM), lambda i: (i, 0))

    compiler_kwargs = dict(dimension_semantics=("parallel",))
    if tile > 1024:
        # Large per-step tiles (v7x big-batch path): raise the scoped VMEM limit.
        compiler_kwargs["vmem_limit_bytes"] = 48 * 1024 * 1024

    def build(single_buffer_params):
        def pspec(shape):
            if single_buffer_params:
                # Constant-index weight/bias blocks never change across the
                # grid: single-buffer them (skips the second VMEM copy).
                return pl.BlockSpec(shape, lambda i: (0, 0),
                                    pipeline_mode=pl.Buffered(1))
            return pl.BlockSpec(shape, lambda i: (0, 0))

        param_specs = []
        for w, b in prepared_params:
            param_specs.append(pspec(w.shape))
            param_specs.append(pspec(b.shape))

        return pl.pallas_call(
            _mlp_kernel,
            out_shape=jax.ShapeDtypeStruct((batch, OUTPUT_DIM), out_dtype),
            grid_spec=pltpu.PrefetchScalarGridSpec(
                num_scalar_prefetch=0,
                grid=(grid,),
                in_specs=[x_spec] + param_specs,
                out_specs=o_spec,
            ),
            compiler_params=pltpu.CompilerParams(**compiler_kwargs),
        )

    try:
        out = build(True)(x, *flat_params)
    except Exception:
        # Fallback for jax versions / lowerings that reject Buffered(1).
        out = build(False)(x, *flat_params)
    return out


def reference_forward(x, params):
    """Pure-JAX f32 reference matching the PyTorch module."""
    h = x
    for i, (w, b) in enumerate(params):
        h = h @ w + b
        if i < len(params) - 1:
            h = jnp.maximum(h, 0.0)
    return h


if __name__ == "__main__":
    key = jax.random.PRNGKey(0)
    key, kx = jax.random.split(key)

    params = init_params(key)
    prepared = prepare_params(params)

    # Small deterministic checks covering the code paths:
    #   batch=8  : single exact tile, grid=1
    #   batch=37 : single full-dim tile (batch not a multiple of 8), grid=1
    #   batch=40 with batch_tile=16 : 3-step grid with masked ragged last block
    for batch, bt in ((8, 1024), (37, 1024), (40, 16)):
        kx, sub = jax.random.split(kx)
        x = jax.random.normal(sub, (batch, INPUT_DIM), jnp.float32)

        out = jax.block_until_ready(physic_set_forward(x, prepared, batch_tile=bt))
        ref = reference_forward(x, params)

        assert out.shape == (batch, OUTPUT_DIM), out.shape
        max_err = float(jnp.max(jnp.abs(out - ref)))
        # Tolerance covers bf16 quantization of x, weights and inter-layer
        # activations at the MXU inputs (f32 accumulation throughout).
        assert jnp.allclose(out, ref, atol=5e-2, rtol=5e-2), max_err

    print("KERNEL_OK")
</pallas_src>

<mosaic_0001>
module attributes {stable_mosaic.version = 11 : i64} {
  func.func @_mlp_kernel(%arg0: i32, %arg1: memref<8x120xbf16, #tpu.memory_space<vmem>>, %arg2: memref<120x384xbf16, #tpu.memory_space<vmem>>, %arg3: memref<1x384xf32, #tpu.memory_space<vmem>>, %arg4: memref<384x256xbf16, #tpu.memory_space<vmem>>, %arg5: memref<1x256xf32, #tpu.memory_space<vmem>>, %arg6: memref<256x128xbf16, #tpu.memory_space<vmem>>, %arg7: memref<1x128xf32, #tpu.memory_space<vmem>>, %arg8: memref<128x128xbf16, #tpu.memory_space<vmem>>, %arg9: memref<1x128xf32, #tpu.memory_space<vmem>>, %arg10: memref<128x128xbf16, #tpu.memory_space<vmem>>, %arg11: memref<1x128xf32, #tpu.memory_space<vmem>>, %arg12: memref<128x256xbf16, #tpu.memory_space<vmem>>, %arg13: memref<1x256xf32, #tpu.memory_space<vmem>>, %arg14: memref<8x256xf32, #tpu.memory_space<vmem>>) attributes {dimension_semantics = [#tpu.dimension_semantics<parallel>], iteration_bounds = array<i64: 1>, scalar_prefetch = 0 : i64, scratch_operands = 0 : i64, tpu.core_type = #tpu.core_type<tc>, window_params = [{transform_indices = @transform_0, window_bounds = array<i64: 8, 120>}, {pipeline_mode = #tpu.pipeline_mode<synchronous>, transform_indices = @transform_1, window_bounds = array<i64: 120, 384>}, {pipeline_mode = #tpu.pipeline_mode<synchronous>, transform_indices = @transform_2, window_bounds = array<i64: 1, 384>}, {pipeline_mode = #tpu.pipeline_mode<synchronous>, transform_indices = @transform_3, window_bounds = array<i64: 384, 256>}, {pipeline_mode = #tpu.pipeline_mode<synchronous>, transform_indices = @transform_4, window_bounds = array<i64: 1, 256>}, {pipeline_mode = #tpu.pipeline_mode<synchronous>, transform_indices = @transform_5, window_bounds = array<i64: 256, 128>}, {pipeline_mode = #tpu.pipeline_mode<synchronous>, transform_indices = @transform_6, window_bounds = array<i64: 1, 128>}, {pipeline_mode = #tpu.pipeline_mode<synchronous>, transform_indices = @transform_7, window_bounds = array<i64: 128, 128>}, {pipeline_mode = #tpu.pipeline_mode<synchronous>, transform_indices = @transform_8, window_bounds = array<i64: 1, 128>}, {pipeline_mode = #tpu.pipeline_mode<synchronous>, transform_indices = @transform_9, window_bounds = array<i64: 128, 128>}, {pipeline_mode = #tpu.pipeline_mode<synchronous>, transform_indices = @transform_10, window_bounds = array<i64: 1, 128>}, {pipeline_mode = #tpu.pipeline_mode<synchronous>, transform_indices = @transform_11, window_bounds = array<i64: 128, 256>}, {pipeline_mode = #tpu.pipeline_mode<synchronous>, transform_indices = @transform_12, window_bounds = array<i64: 1, 256>}, {transform_indices = @transform_13, window_bounds = array<i64: 8, 256>}]} {
    %c0 = arith.constant 0 : index
    %c0_0 = arith.constant 0 : index
    %0 = vector.load %arg1[%c0, %c0_0] : memref<8x120xbf16, #tpu.memory_space<vmem>>, vector<8x120xbf16>
    %c0_1 = arith.constant 0 : index
    %c0_2 = arith.constant 0 : index
    %1 = vector.load %arg2[%c0_1, %c0_2] : memref<120x384xbf16, #tpu.memory_space<vmem>>, vector<120x384xbf16>
    %cst = arith.constant dense<0.000000e+00> : vector<8x384xf32>
    %2 = tpu.matmul %0, %1, %cst {dimension_numbers = #tpu.dot_dimension_numbers<[1], [0], [0], [1], [0, 0, 1, 1], [], []>} : vector<8x120xbf16>, vector<120x384xbf16>, vector<8x384xf32> -> vector<8x384xf32>
    %c0_3 = arith.constant 0 : index
    %c0_4 = arith.constant 0 : index
    %3 = vector.load %arg3[%c0_3, %c0_4] : memref<1x384xf32, #tpu.memory_space<vmem>>, vector<1x384xf32>
    %4 = vector.broadcast %3 : vector<1x384xf32> to vector<8x384xf32>
    %5 = arith.addf %2, %4 : vector<8x384xf32>
    %cst_5 = arith.constant 0.000000e+00 : f32
    %6 = vector.broadcast %cst_5 : f32 to vector<8x384xf32>
    %7 = arith.maximumf %5, %6 : vector<8x384xf32>
    %8 = arith.truncf %7 : vector<8x384xf32> to vector<8x384xbf16>
    %c0_6 = arith.constant 0 : index
    %c0_7 = arith.constant 0 : index
    %9 = vector.load %arg4[%c0_6, %c0_7] : memref<384x256xbf16, #tpu.memory_space<vmem>>, vector<384x256xbf16>
    %cst_8 = arith.constant dense<0.000000e+00> : vector<8x256xf32>
    %10 = tpu.matmul %8, %9, %cst_8 {dimension_numbers = #tpu.dot_dimension_numbers<[1], [0], [0], [1], [0, 0, 1, 1], [], []>} : vector<8x384xbf16>, vector<384x256xbf16>, vector<8x256xf32> -> vector<8x256xf32>
    %c0_9 = arith.constant 0 : index
    %c0_10 = arith.constant 0 : index
    %11 = vector.load %arg5[%c0_9, %c0_10] : memref<1x256xf32, #tpu.memory_space<vmem>>, vector<1x256xf32>
    %12 = vector.broadcast %11 : vector<1x256xf32> to vector<8x256xf32>
    %13 = arith.addf %10, %12 : vector<8x256xf32>
    %cst_11 = arith.constant 0.000000e+00 : f32
    %14 = vector.broadcast %cst_11 : f32 to vector<8x256xf32>
    %15 = arith.maximumf %13, %14 : vector<8x256xf32>
    %16 = arith.truncf %15 : vector<8x256xf32> to vector<8x256xbf16>
    %c0_12 = arith.constant 0 : index
    %c0_13 = arith.constant 0 : index
    %17 = vector.load %arg6[%c0_12, %c0_13] : memref<256x128xbf16, #tpu.memory_space<vmem>>, vector<256x128xbf16>
    %cst_14 = arith.constant dense<0.000000e+00> : vector<8x128xf32>
    %18 = tpu.matmul %16, %17, %cst_14 {dimension_numbers = #tpu.dot_dimension_numbers<[1], [0], [0], [1], [0, 0, 1, 1], [], []>} : vector<8x256xbf16>, vector<256x128xbf16>, vector<8x128xf32> -> vector<8x128xf32>
    %c0_15 = arith.constant 0 : index
    %c0_16 = arith.constant 0 : index
    %19 = vector.load %arg7[%c0_15, %c0_16] : memref<1x128xf32, #tpu.memory_space<vmem>>, vector<1x128xf32>
    %20 = vector.broadcast %19 : vector<1x128xf32> to vector<8x128xf32>
    %21 = arith.addf %18, %20 : vector<8x128xf32>
    %cst_17 = arith.constant 0.000000e+00 : f32
    %22 = vector.broadcast %cst_17 : f32 to vector<8x128xf32>
    %23 = arith.maximumf %21, %22 : vector<8x128xf32>
    %24 = arith.truncf %23 : vector<8x128xf32> to vector<8x128xbf16>
    %c0_18 = arith.constant 0 : index
    %c0_19 = arith.constant 0 : index
    %25 = vector.load %arg8[%c0_18, %c0_19] : memref<128x128xbf16, #tpu.memory_space<vmem>>, vector<128x128xbf16>
    %cst_20 = arith.constant dense<0.000000e+00> : vector<8x128xf32>
    %26 = tpu.matmul %24, %25, %cst_20 {dimension_numbers = #tpu.dot_dimension_numbers<[1], [0], [0], [1], [0, 0, 1, 1], [], []>} : vector<8x128xbf16>, vector<128x128xbf16>, vector<8x128xf32> -> vector<8x128xf32>
    %c0_21 = arith.constant 0 : index
    %c0_22 = arith.constant 0 : index
    %27 = vector.load %arg9[%c0_21, %c0_22] : memref<1x128xf32, #tpu.memory_space<vmem>>, vector<1x128xf32>
    %28 = vector.broadcast %27 : vector<1x128xf32> to vector<8x128xf32>
    %29 = arith.addf %26, %28 : vector<8x128xf32>
    %cst_23 = arith.constant 0.000000e+00 : f32
    %30 = vector.broadcast %cst_23 : f32 to vector<8x128xf32>
    %31 = arith.maximumf %29, %30 : vector<8x128xf32>
    %32 = arith.truncf %31 : vector<8x128xf32> to vector<8x128xbf16>
    %c0_24 = arith.constant 0 : index
    %c0_25 = arith.constant 0 : index
    %33 = vector.load %arg10[%c0_24, %c0_25] : memref<128x128xbf16, #tpu.memory_space<vmem>>, vector<128x128xbf16>
    %cst_26 = arith.constant dense<0.000000e+00> : vector<8x128xf32>
    %34 = tpu.matmul %32, %33, %cst_26 {dimension_numbers = #tpu.dot_dimension_numbers<[1], [0], [0], [1], [0, 0, 1, 1], [], []>} : vector<8x128xbf16>, vector<128x128xbf16>, vector<8x128xf32> -> vector<8x128xf32>
    %c0_27 = arith.constant 0 : index
    %c0_28 = arith.constant 0 : index
    %35 = vector.load %arg11[%c0_27, %c0_28] : memref<1x128xf32, #tpu.memory_space<vmem>>, vector<1x128xf32>
    %36 = vector.broadcast %35 : vector<1x128xf32> to vector<8x128xf32>
    %37 = arith.addf %34, %36 : vector<8x128xf32>
    %cst_29 = arith.constant 0.000000e+00 : f32
    %38 = vector.broadcast %cst_29 : f32 to vector<8x128xf32>
    %39 = arith.maximumf %37, %38 : vector<8x128xf32>
    %40 = arith.truncf %39 : vector<8x128xf32> to vector<8x128xbf16>
    %c0_30 = arith.constant 0 : index
    %c0_31 = arith.constant 0 : index
    %41 = vector.load %arg12[%c0_30, %c0_31] : memref<128x256xbf16, #tpu.memory_space<vmem>>, vector<128x256xbf16>
    %cst_32 = arith.constant dense<0.000000e+00> : vector<8x256xf32>
    %42 = tpu.matmul %40, %41, %cst_32 {dimension_numbers = #tpu.dot_dimension_numbers<[1], [0], [0], [1], [0, 0, 1, 1], [], []>} : vector<8x128xbf16>, vector<128x256xbf16>, vector<8x256xf32> -> vector<8x256xf32>
    %c0_33 = arith.constant 0 : index
    %c0_34 = arith.constant 0 : index
    %43 = vector.load %arg13[%c0_33, %c0_34] : memref<1x256xf32, #tpu.memory_space<vmem>>, vector<1x256xf32>
    %44 = vector.broadcast %43 : vector<1x256xf32> to vector<8x256xf32>
    %45 = arith.addf %42, %44 : vector<8x256xf32>
    %c0_35 = arith.constant 0 : index
    %c0_36 = arith.constant 0 : index
    %46 = vector.load %arg14[%c0_35, %c0_36] : memref<8x256xf32, #tpu.memory_space<vmem>>, vector<8x256xf32>
    tpu.vector_store %arg14[%c0_35, %c0_36], %45 {strides = array<i32>} : memref<8x256xf32, #tpu.memory_space<vmem>>, vector<8x256xf32>,
    return
  }
  func.func @transform_0(%arg0: i32) -> (i32, i32) {
    %c0_i32 = arith.constant 0 : i32
    %c0_i32_0 = arith.constant 0 : i32
    return %arg0, %c0_i32 : i32, i32
  }
  func.func @transform_1(%arg0: i32) -> (i32, i32) {
    %c0_i32 = arith.constant 0 : i32
    %c0_i32_0 = arith.constant 0 : i32
    %c0_i32_1 = arith.constant 0 : i32
    return %c0_i32, %c0_i32_0 : i32, i32
  }
  func.func @transform_2(%arg0: i32) -> (i32, i32) {
    %c0_i32 = arith.constant 0 : i32
    %c0_i32_0 = arith.constant 0 : i32
    %c0_i32_1 = arith.constant 0 : i32
    return %c0_i32, %c0_i32_0 : i32, i32
  }
  func.func @transform_3(%arg0: i32) -> (i32, i32) {
    %c0_i32 = arith.constant 0 : i32
    %c0_i32_0 = arith.constant 0 : i32
    %c0_i32_1 = arith.constant 0 : i32
    return %c0_i32, %c0_i32_0 : i32, i32
  }
  func.func @transform_4(%arg0: i32) -> (i32, i32) {
    %c0_i32 = arith.constant 0 : i32
    %c0_i32_0 = arith.constant 0 : i32
    %c0_i32_1 = arith.constant 0 : i32
    return %c0_i32, %c0_i32_0 : i32, i32
  }
  func.func @transform_5(%arg0: i32) -> (i32, i32) {
    %c0_i32 = arith.constant 0 : i32
    %c0_i32_0 = arith.constant 0 : i32
    %c0_i32_1 = arith.constant 0 : i32
    return %c0_i32, %c0_i32_0 : i32, i32
  }
  func.func @transform_6(%arg0: i32) -> (i32, i32) {
    %c0_i32 = arith.constant 0 : i32
    %c0_i32_0 = arith.constant 0 : i32
    %c0_i32_1 = arith.constant 0 : i32
    return %c0_i32, %c0_i32_0 : i32, i32
  }
  func.func @transform_7(%arg0: i32) -> (i32, i32) {
    %c0_i32 = arith.constant 0 : i32
    %c0_i32_0 = arith.constant 0 : i32
    %c0_i32_1 = arith.constant 0 : i32
    return %c0_i32, %c0_i32_0 : i32, i32
  }
  func.func @transform_8(%arg0: i32) -> (i32, i32) {
    %c0_i32 = arith.constant 0 : i32
    %c0_i32_0 = arith.constant 0 : i32
    %c0_i32_1 = arith.constant 0 : i32
    return %c0_i32, %c0_i32_0 : i32, i32
  }
  func.func @transform_9(%arg0: i32) -> (i32, i32) {
    %c0_i32 = arith.constant 0 : i32
    %c0_i32_0 = arith.constant 0 : i32
    %c0_i32_1 = arith.constant 0 : i32
    return %c0_i32, %c0_i32_0 : i32, i32
  }
  func.func @transform_10(%arg0: i32) -> (i32, i32) {
    %c0_i32 = arith.constant 0 : i32
    %c0_i32_0 = arith.constant 0 : i32
    %c0_i32_1 = arith.constant 0 : i32
    return %c0_i32, %c0_i32_0 : i32, i32
  }
  func.func @transform_11(%arg0: i32) -> (i32, i32) {
    %c0_i32 = arith.constant 0 : i32
    %c0_i32_0 = arith.constant 0 : i32
    %c0_i32_1 = arith.constant 0 : i32
    return %c0_i32, %c0_i32_0 : i32, i32
  }
  func.func @transform_12(%arg0: i32) -> (i32, i32) {
    %c0_i32 = arith.constant 0 : i32
    %c0_i32_0 = arith.constant 0 : i32
    %c0_i32_1 = arith.constant 0 : i32
    return %c0_i32, %c0_i32_0 : i32, i32
  }
  func.func @transform_13(%arg0: i32) -> (i32, i32) {
    %c0_i32 = arith.constant 0 : i32
    %c0_i32_0 = arith.constant 0 : i32
    return %arg0, %c0_i32 : i32, i32
  }
}

module attributes {stable_mosaic.version = 11 : i64} {
  func.func @_mlp_kernel(%arg0: i32, %arg1: memref<8x120xbf16, #tpu.memory_space<vmem>>, %arg2: memref<120x384xbf16, #tpu.memory_space<vmem>>, %arg3: memref<1x384xf32, #tpu.memory_space<vmem>>, %arg4: memref<384x256xbf16, #tpu.memory_space<vmem>>, %arg5: memref<1x256xf32, #tpu.memory_space<vmem>>, %arg6: memref<256x128xbf16, #tpu.memory_space<vmem>>, %arg7: memref<1x128xf32, #tpu.memory_space<vmem>>, %arg8: memref<128x128xbf16, #tpu.memory_space<vmem>>, %arg9: memref<1x128xf32, #tpu.memory_space<vmem>>, %arg10: memref<128x128xbf16, #tpu.memory_space<vmem>>, %arg11: memref<1x128xf32, #tpu.memory_space<vmem>>, %arg12: memref<128x256xbf16, #tpu.memory_space<vmem>>, %arg13: memref<1x256xf32, #tpu.memory_space<vmem>>, %arg14: memref<8x256xf32, #tpu.memory_space<vmem>>) attributes {dimension_semantics = [#tpu.dimension_semantics<parallel>], iteration_bounds = array<i64: 1>, scalar_prefetch = 0 : i64, scratch_operands = 0 : i64, tpu.core_type = #tpu.core_type<tc>, window_params = [{transform_indices = @transform_0, window_bounds = array<i64: 8, 120>}, {pipeline_mode = #tpu.pipeline_mode<synchronous>, transform_indices = @transform_1, window_bounds = array<i64: 120, 384>}, {pipeline_mode = #tpu.pipeline_mode<synchronous>, transform_indices = @transform_2, window_bounds = array<i64: 1, 384>}, {pipeline_mode = #tpu.pipeline_mode<synchronous>, transform_indices = @transform_3, window_bounds = array<i64: 384, 256>}, {pipeline_mode = #tpu.pipeline_mode<synchronous>, transform_indices = @transform_4, window_bounds = array<i64: 1, 256>}, {pipeline_mode = #tpu.pipeline_mode<synchronous>, transform_indices = @transform_5, window_bounds = array<i64: 256, 128>}, {pipeline_mode = #tpu.pipeline_mode<synchronous>, transform_indices = @transform_6, window_bounds = array<i64: 1, 128>}, {pipeline_mode = #tpu.pipeline_mode<synchronous>, transform_indices = @transform_7, window_bounds = array<i64: 128, 128>}, {pipeline_mode = #tpu.pipeline_mode<synchronous>, transform_indices = @transform_8, window_bounds = array<i64: 1, 128>}, {pipeline_mode = #tpu.pipeline_mode<synchronous>, transform_indices = @transform_9, window_bounds = array<i64: 128, 128>}, {pipeline_mode = #tpu.pipeline_mode<synchronous>, transform_indices = @transform_10, window_bounds = array<i64: 1, 128>}, {pipeline_mode = #tpu.pipeline_mode<synchronous>, transform_indices = @transform_11, window_bounds = array<i64: 128, 256>}, {pipeline_mode = #tpu.pipeline_mode<synchronous>, transform_indices = @transform_12, window_bounds = array<i64: 1, 256>}, {transform_indices = @transform_13, window_bounds = array<i64: 8, 256>}]} {
    %c0 = arith.constant 0 : index
    %c0_0 = arith.constant 0 : index
    %0 = vector.load %arg1[%c0, %c0_0] : memref<8x120xbf16, #tpu.memory_space<vmem>>, vector<8x120xbf16>
    %c0_1 = arith.constant 0 : index
    %c0_2 = arith.constant 0 : index
    %1 = vector.load %arg2[%c0_1, %c0_2] : memref<120x384xbf16, #tpu.memory_space<vmem>>, vector<120x384xbf16>
    %cst = arith.constant dense<0.000000e+00> : vector<8x384xf32>
    %2 = tpu.matmul %0, %1, %cst {dimension_numbers = #tpu.dot_dimension_numbers<[1], [0], [0], [1], [0, 0, 1, 1], [], []>} : vector<8x120xbf16>, vector<120x384xbf16>, vector<8x384xf32> -> vector<8x384xf32>
    %c0_3 = arith.constant 0 : index
    %c0_4 = arith.constant 0 : index
    %3 = vector.load %arg3[%c0_3, %c0_4] : memref<1x384xf32, #tpu.memory_space<vmem>>, vector<1x384xf32>
    %4 = vector.broadcast %3 : vector<1x384xf32> to vector<8x384xf32>
    %5 = arith.addf %2, %4 : vector<8x384xf32>
    %cst_5 = arith.constant 0.000000e+00 : f32
    %6 = vector.broadcast %cst_5 : f32 to vector<8x384xf32>
    %7 = arith.maximumf %5, %6 : vector<8x384xf32>
    %8 = arith.truncf %7 : vector<8x384xf32> to vector<8x384xbf16>
    %c0_6 = arith.constant 0 : index
    %c0_7 = arith.constant 0 : index
    %9 = vector.load %arg4[%c0_6, %c0_7] : memref<384x256xbf16, #tpu.memory_space<vmem>>, vector<384x256xbf16>
    %cst_8 = arith.constant dense<0.000000e+00> : vector<8x256xf32>
    %10 = tpu.matmul %8, %9, %cst_8 {dimension_numbers = #tpu.dot_dimension_numbers<[1], [0], [0], [1], [0, 0, 1, 1], [], []>} : vector<8x384xbf16>, vector<384x256xbf16>, vector<8x256xf32> -> vector<8x256xf32>
    %c0_9 = arith.constant 0 : index
    %c0_10 = arith.constant 0 : index
    %11 = vector.load %arg5[%c0_9, %c0_10] : memref<1x256xf32, #tpu.memory_space<vmem>>, vector<1x256xf32>
    %12 = vector.broadcast %11 : vector<1x256xf32> to vector<8x256xf32>
    %13 = arith.addf %10, %12 : vector<8x256xf32>
    %cst_11 = arith.constant 0.000000e+00 : f32
    %14 = vector.broadcast %cst_11 : f32 to vector<8x256xf32>
    %15 = arith.maximumf %13, %14 : vector<8x256xf32>
    %16 = arith.truncf %15 : vector<8x256xf32> to vector<8x256xbf16>
    %c0_12 = arith.constant 0 : index
    %c0_13 = arith.constant 0 : index
    %17 = vector.load %arg6[%c0_12, %c0_13] : memref<256x128xbf16, #tpu.memory_space<vmem>>, vector<256x128xbf16>
    %cst_14 = arith.constant dense<0.000000e+00> : vector<8x128xf32>
    %18 = tpu.matmul %16, %17, %cst_14 {dimension_numbers = #tpu.dot_dimension_numbers<[1], [0], [0], [1], [0, 0, 1, 1], [], []>} : vector<8x256xbf16>, vector<256x128xbf16>, vector<8x128xf32> -> vector<8x128xf32>
    %c0_15 = arith.constant 0 : index
    %c0_16 = arith.constant 0 : index
    %19 = vector.load %arg7[%c0_15, %c0_16] : memref<1x128xf32, #tpu.memory_space<vmem>>, vector<1x128xf32>
    %20 = vector.broadcast %19 : vector<1x128xf32> to vector<8x128xf32>
    %21 = arith.addf %18, %20 : vector<8x128xf32>
    %cst_17 = arith.constant 0.000000e+00 : f32
    %22 = vector.broadcast %cst_17 : f32 to vector<8x128xf32>
    %23 = arith.maximumf %21, %22 : vector<8x128xf32>
    %24 = arith.truncf %23 : vector<8x128xf32> to vector<8x128xbf16>
    %c0_18 = arith.constant 0 : index
    %c0_19 = arith.constant 0 : index
    %25 = vector.load %arg8[%c0_18, %c0_19] : memref<128x128xbf16, #tpu.memory_space<vmem>>, vector<128x128xbf16>
    %cst_20 = arith.constant dense<0.000000e+00> : vector<8x128xf32>
    %26 = tpu.matmul %24, %25, %cst_20 {dimension_numbers = #tpu.dot_dimension_numbers<[1], [0], [0], [1], [0, 0, 1, 1], [], []>} : vector<8x128xbf16>, vector<128x128xbf16>, vector<8x128xf32> -> vector<8x128xf32>
    %c0_21 = arith.constant 0 : index
    %c0_22 = arith.constant 0 : index
    %27 = vector.load %arg9[%c0_21, %c0_22] : memref<1x128xf32, #tpu.memory_space<vmem>>, vector<1x128xf32>
    %28 = vector.broadcast %27 : vector<1x128xf32> to vector<8x128xf32>
    %29 = arith.addf %26, %28 : vector<8x128xf32>
    %cst_23 = arith.constant 0.000000e+00 : f32
    %30 = vector.broadcast %cst_23 : f32 to vector<8x128xf32>
    %31 = arith.maximumf %29, %30 : vector<8x128xf32>
    %32 = arith.truncf %31 : vector<8x128xf32> to vector<8x128xbf16>
    %c0_24 = arith.constant 0 : index
    %c0_25 = arith.constant 0 : index
    %33 = vector.load %arg10[%c0_24, %c0_25] : memref<128x128xbf16, #tpu.memory_space<vmem>>, vector<128x128xbf16>
    %cst_26 = arith.constant dense<0.000000e+00> : vector<8x128xf32>
    %34 = tpu.matmul %32, %33, %cst_26 {dimension_numbers = #tpu.dot_dimension_numbers<[1], [0], [0], [1], [0, 0, 1, 1], [], []>} : vector<8x128xbf16>, vector<128x128xbf16>, vector<8x128xf32> -> vector<8x128xf32>
    %c0_27 = arith.constant 0 : index
    %c0_28 = arith.constant 0 : index
    %35 = vector.load %arg11[%c0_27, %c0_28] : memref<1x128xf32, #tpu.memory_space<vmem>>, vector<1x128xf32>
    %36 = vector.broadcast %35 : vector<1x128xf32> to vector<8x128xf32>
    %37 = arith.addf %34, %36 : vector<8x128xf32>
    %cst_29 = arith.constant 0.000000e+00 : f32
    %38 = vector.broadcast %cst_29 : f32 to vector<8x128xf32>
    %39 = arith.maximumf %37, %38 : vector<8x128xf32>
    %40 = arith.truncf %39 : vector<8x128xf32> to vector<8x128xbf16>
    %c0_30 = arith.constant 0 : index
    %c0_31 = arith.constant 0 : index
    %41 = vector.load %arg12[%c0_30, %c0_31] : memref<128x256xbf16, #tpu.memory_space<vmem>>, vector<128x256xbf16>
    %cst_32 = arith.constant dense<0.000000e+00> : vector<8x256xf32>
    %42 = tpu.matmul %40, %41, %cst_32 {dimension_numbers = #tpu.dot_dimension_numbers<[1], [0], [0], [1], [0, 0, 1, 1], [], []>} : vector<8x128xbf16>, vector<128x256xbf16>, vector<8x256xf32> -> vector<8x256xf32>
    %c0_33 = arith.constant 0 : index
    %c0_34 = arith.constant 0 : index
    %43 = vector.load %arg13[%c0_33, %c0_34] : memref<1x256xf32, #tpu.memory_space<vmem>>, vector<1x256xf32>
    %44 = vector.broadcast %43 : vector<1x256xf32> to vector<8x256xf32>
    %45 = arith.addf %42, %44 : vector<8x256xf32>
    %c0_35 = arith.constant 0 : index
    %c0_36 = arith.constant 0 : index
    %46 = vector.load %arg14[%c0_35, %c0_36] : memref<8x256xf32, #tpu.memory_space<vmem>>, vector<8x256xf32>
    tpu.vector_store %arg14[%c0_35, %c0_36], %45 {strides = array<i32>} : memref<8x256xf32, #tpu.memory_space<vmem>>, vector<8x256xf32>,
    return
  }
  func.func @transform_0(%arg0: i32) -> (i32, i32) {
    %c0_i32 = arith.constant 0 : i32
    %c0_i32_0 = arith.constant 0 : i32
    return %arg0, %c0_i32 : i32, i32
  }
  func.func @transform_1(%arg0: i32) -> (i32, i32) {
    %c0_i32 = arith.constant 0 : i32
    %c0_i32_0 = arith.constant 0 : i32
    %c0_i32_1 = arith.constant 0 : i32
    return %c0_i32, %c0_i32_0 : i32, i32
  }
  func.func @transform_2(%arg0: i32) -> (i32, i32) {
    %c0_i32 = arith.constant 0 : i32
    %c0_i32_0 = arith.constant 0 : i32
    %c0_i32_1 = arith.constant 0 : i32
    return %c0_i32, %c0_i32_0 : i32, i32
  }
  func.func @transform_3(%arg0: i32) -> (i32, i32) {
    %c0_i32 = arith.constant 0 : i32
    %c0_i32_0 = arith.constant 0 : i32
    %c0_i32_1 = arith.constant 0 : i32
    return %c0_i32, %c0_i32_0 : i32, i32
  }
  func.func @transform_4(%arg0: i32) -> (i32, i32) {
    %c0_i32 = arith.constant 0 : i32
    %c0_i32_0 = arith.constant 0 : i32
    %c0_i32_1 = arith.constant 0 : i32
    return %c0_i32, %c0_i32_0 : i32, i32
  }
  func.func @transform_5(%arg0: i32) -> (i32, i32) {
    %c0_i32 = arith.constant 0 : i32
    %c0_i32_0 = arith.constant 0 : i32
    %c0_i32_1 = arith.constant 0 : i32
    return %c0_i32, %c0_i32_0 : i32, i32
  }
  func.func @transform_6(%arg0: i32) -> (i32, i32) {
    %c0_i32 = arith.constant 0 : i32
    %c0_i32_0 = arith.constant 0 : i32
    %c0_i32_1 = arith.constant 0 : i32
    return %c0_i32, %c0_i32_0 : i32, i32
  }
  func.func @transform_7(%arg0: i32) -> (i32, i32) {
    %c0_i32 = arith.constant 0 : i32
    %c0_i32_0 = arith.constant 0 : i32
    %c0_i32_1 = arith.constant 0 : i32
    return %c0_i32, %c0_i32_0 : i32, i32
  }
  func.func @transform_8(%arg0: i32) -> (i32, i32) {
    %c0_i32 = arith.constant 0 : i32
    %c0_i32_0 = arith.constant 0 : i32
    %c0_i32_1 = arith.constant 0 : i32
    return %c0_i32, %c0_i32_0 : i32, i32
  }
  func.func @transform_9(%arg0: i32) -> (i32, i32) {
    %c0_i32 = arith.constant 0 : i32
    %c0_i32_0 = arith.constant 0 : i32
    %c0_i32_1 = arith.constant 0 : i32
    return %c0_i32, %c0_i32_0 : i32, i32
  }
  func.func @transform_10(%arg0: i32) -> (i32, i32) {
    %c0_i32 = arith.constant 0 : i32
    %c0_i32_0 = arith.constant 0 : i32
    %c0_i32_1 = arith.constant 0 : i32
    return %c0_i32, %c0_i32_0 : i32, i32
  }
  func.func @transform_11(%arg0: i32) -> (i32, i32) {
    %c0_i32 = arith.constant 0 : i32
    %c0_i32_0 = arith.constant 0 : i32
    %c0_i32_1 = arith.constant 0 : i32
    return %c0_i32, %c0_i32_0 : i32, i32
  }
  func.func @transform_12(%arg0: i32) -> (i32, i32) {
    %c0_i32 = arith.constant 0 : i32
    %c0_i32_0 = arith.constant 0 : i32
    %c0_i32_1 = arith.constant 0 : i32
    return %c0_i32, %c0_i32_0 : i32, i32
  }
  func.func @transform_13(%arg0: i32) -> (i32, i32) {
    %c0_i32 = arith.constant 0 : i32
    %c0_i32_0 = arith.constant 0 : i32
    return %arg0, %c0_i32 : i32, i32
  }
}

</mosaic_0001>

<bundles_post_ra>
// kernel: tpu_custom_call.1
= control target key start
LH: loop header
LB: loop body
LE: loop exit
PB: predicated region body
PF: predicated region fallthrough
CT: control target
= control target key end

     0   :  { %18 = vsyncpa [#allocation3], 0  ;;  %s2128_s0 = inlined_call_operand.hbm [shape: bf16[8,120], index: 0, kind: input, shape index: {}]   ;;  %s2129_s1 = inlined_call_operand.hbm [shape: bf16[120,384], index: 1, kind: input, shape index: {}]   ;;  %s2130_s2 = inlined_call_operand.vmem [shape: f32[1,384], index: 2, kind: input, shape index: {}]   ;;  %s2131_s3 = inlined_call_operand.hbm [shape: bf16[384,256], index: 3, kind: input, shape index: {}]   ;;  %s2132_s4 = inlined_call_operand.vmem [shape: f32[1,256], index: 4, kind: input, shape index: {}]   ;;  %s2133_s5 = inlined_call_operand.hbm [shape: bf16[256,128], index: 5, kind: input, shape index: {}]   ;;  %s2134_s6 = inlined_call_operand.vmem [shape: f32[1,128], index: 6, kind: input, shape index: {}]   ;;  %s2135_s7 = inlined_call_operand.hbm [shape: bf16[128,128], index: 7, kind: input, shape index: {}]   ;;  %s2136_s8 = inlined_call_operand.vmem [shape: f32[1,128], index: 8, kind: input, shape index: {}]   ;;  %s2137_s9 = inlined_call_operand.hbm [shape: bf16[128,128], index: 9, kind: input, shape index: {}]   ;;  %s2138_s10 = inlined_call_operand.vmem [shape: f32[1,128], index: 10, kind: input, shape index: {}]   ;;  %s2139_s11 = inlined_call_operand.hbm [shape: bf16[128,256], index: 11, kind: input, shape index: {}]   ;;  %s2140_s12 = inlined_call_operand.vmem [shape: f32[1,256], index: 12, kind: input, shape index: {}]   ;;  %s2141_s13 = inlined_call_operand.hbm [shape: f32[8,256], index: 13, kind: output, shape index: {}]  }
   0x1   :  { %19 = vsyncpa [#allocation6], 0 }
   0x2   :  { %20 = vsyncpa [#allocation9], 0 }
   0x3   :  { %21 = vsyncpa [#allocation12], 0 }
   0x4   :  { %22 = vsyncpa [#allocation4], 0  ;;  %s1947_s25 = smov [#allocation5]  }
   0x5   :  { %s38_s26 = sshll.u32 %s1947_s25, 4  ;;  %s39_s26 = int_to_ptr.vmem [resolvable:$true] %s38_s26 }
   0x6   :  { %s1785_s27 = scalar_lea.vmem %s39_s26, 2880  ;;  %p1790_p1 = scmp.lt.s32.totalorder %s39_s26, %s39_s26 }
   0x7   :  { %p1786_p0 = scmp.ne.s32.totalorder %s39_s26, %s1785_s27  ;;  %p1791_p2 = scmp.lt.s32.totalorder %s1785_s27, %s1785_s27 }
   0x9   :  { %p1792_p3 = por %p1791_p2, %p1790_p1 }
   0xb   :  { %p1793_p4 = pnand %p1792_p3, %p1786_p0 }
   0xd   :  { %1796 = shalt.err (!%p1793_p4)
}
   0xe   :  { %s1948_s28 = smov 192   ;;  %s1949_s29 = smov 12  }
   0xf   :  { %44 = dma.hbm_to_vmem [thread:$0]  %s2129_s1, 2880, %s39_s26, [#allocation6], %s1948_s28, %s1948_s28, %s1949_s29  }
  0x10   :  { %s1950_s15 = smov [#allocation8]  }
  0x11   :  { %s66_s16 = sshll.u32 %s1950_s15, 4  ;;  %s67_s16 = int_to_ptr.vmem [resolvable:$true] %s66_s16 }
  0x12   :  { %s1805_s17 = scalar_lea.vmem %s67_s16, 2048  ;;  %p1810_p6 = scmp.lt.s32.totalorder %s67_s16, %s67_s16 }
  0x13   :  { %p1806_p5 = scmp.ne.s32.totalorder %s67_s16, %s1805_s17  ;;  %p1811_p7 = scmp.lt.s32.totalorder %s1805_s17, %s1805_s17 }
  0x15   :  { %p1812_p8 = por %p1811_p7, %p1810_p6 }
  0x17   :  { %p1813_p9 = pnand %p1812_p8, %p1806_p5 }
  0x19   :  { %1816 = shalt.err (!%p1813_p9)
}
  0x1a   :  { %s1951_s18 = smov 64   ;;  %s1952_s19 = smov 4  }
  0x1b   :  { %72 = dma.hbm_to_vmem [thread:$0]  %s2133_s5, 2048, %s67_s16, [#allocation9], %s1951_s18, %s1951_s18, %s1952_s19  }
  0x1c   :  { %s1953_s1 = smov [#allocation11]   ;;  %s1954_s23 = smov [#allocation2]  }
  0x1d   :  { %s94_s22 = sshll.u32 %s1953_s1, 4  ;;  %s29_s24 = sshll.u32 %s1954_s23, 4  ;;  %s95_s22 = int_to_ptr.vmem [resolvable:$true] %s94_s22  ;;  %s30_s24 = int_to_ptr.vmem [resolvable:$true] %s29_s24 }
  0x1e   :  { %s1825_s25 = scalar_lea.vmem %s95_s22, 1024  ;;  %p1830_p11 = scmp.lt.s32.totalorder %s95_s22, %s95_s22 }
  0x1f   :  { %p1826_p10 = scmp.ne.s32.totalorder %s95_s22, %s1825_s25  ;;  %p1831_p12 = scmp.lt.s32.totalorder %s1825_s25, %s1825_s25 }
  0x21   :  { %p1832_p13 = por %p1831_p12, %p1830_p11 }
  0x23   :  { %p1833_p0 = pnand %p1832_p13, %p1826_p10 }
  0x25   :  { %1836 = shalt.err (!%p1833_p0)
}
  0x26   :  { %100 = dma.hbm_to_vmem [thread:$0]  %s2137_s9, 1024, %s95_s22, [#allocation12], %s1951_s18, %s1951_s18, %s1952_s19  }
  0x27   :  { %s1845_s5 = scalar_lea.vmem %s30_s24, 64  ;;  %p1850_p2 = scmp.lt.s32.totalorder %s30_s24, %s30_s24 }
  0x28   :  { %p1846_p1 = scmp.ne.s32.totalorder %s30_s24, %s1845_s5  ;;  %p1851_p3 = scmp.lt.s32.totalorder %s1845_s5, %s1845_s5 }
  0x2a   :  { %p1852_p4 = por %p1851_p3, %p1850_p2 }
  0x2c   :  { %p1853_p5 = pnand %p1852_p4, %p1846_p1 }
  0x2e   :  { %1856 = shalt.err (!%p1853_p5)
}
  0x2f   :  { %32 = dma.hbm_to_vmem [thread:$0]  %s2128_s0, 64, %s30_s24, [#allocation3]  }
  0x30   :  { %s1955_s30 = smov [#allocation7]  }
  0x31   :  { %s52_s14 = sshll.u32 %s1955_s30, 4  ;;  %s53_s14 = int_to_ptr.vmem [resolvable:$true] %s52_s14 }
  0x32   :  { %s1865_s15 = scalar_lea.vmem %s53_s14, 6144  ;;  %p1870_p7 = scmp.lt.s32.totalorder %s53_s14, %s53_s14 }
  0x33   :  { %p1866_p6 = scmp.ne.s32.totalorder %s53_s14, %s1865_s15  ;;  %p1871_p8 = scmp.lt.s32.totalorder %s1865_s15, %s1865_s15 }
  0x35   :  { %p1872_p9 = por %p1871_p8, %p1870_p7 }
  0x37   :  { %p1873_p10 = pnand %p1872_p9, %p1866_p6 }
  0x39   :  { %1876 = shalt.err (!%p1873_p10)
}
  0x3a   :  { %s1956_s9 = smov 128   ;;  %s1957_s16 = smov 8  }
  0x3b   :  { %58 = dma.hbm_to_vmem [thread:$0]  %s2131_s3, 6144, %s53_s14, [#allocation6], %s1956_s9, %s1956_s9, %s1957_s16  }
  0x3c   :  { %s1958_s21 = smov [#allocation10]   ;;  %s1959_s0 = smov [#allocation13]  }
  0x3d   :  { %s80_s1 = sshll.u32 %s1958_s21, 4  ;;  %s108_s22 = sshll.u32 %s1959_s0, 4  ;;  %s81_s1 = int_to_ptr.vmem [resolvable:$true] %s80_s1  ;;  %s109_s22 = int_to_ptr.vmem [resolvable:$true] %s108_s22 }
  0x3e   :  { %s1885_s23 = scalar_lea.vmem %s81_s1, 1024  ;;  %p1890_p12 = scmp.lt.s32.totalorder %s81_s1, %s81_s1 }
  0x3f   :  { %p1886_p11 = scmp.ne.s32.totalorder %s81_s1, %s1885_s23  ;;  %p1891_p13 = scmp.lt.s32.totalorder %s1885_s23, %s1885_s23 }
  0x41   :  { %p1892_p0 = por %p1891_p13, %p1890_p12 }
  0x43   :  { %p1893_p1 = pnand %p1892_p0, %p1886_p11 }
  0x45   :  { %1896 = shalt.err (!%p1893_p1)
}
  0x46   :  { %86 = dma.hbm_to_vmem [thread:$0]  %s2135_s7, 1024, %s81_s1, [#allocation9], %s1951_s18, %s1951_s18, %s1952_s19  }
  0x47   :  { %s1905_s3 = scalar_lea.vmem %s109_s22, 2048  ;;  %p1910_p3 = scmp.lt.s32.totalorder %s109_s22, %s109_s22 }
  0x48   :  { %p1906_p2 = scmp.ne.s32.totalorder %s109_s22, %s1905_s3  ;;  %p1911_p4 = scmp.lt.s32.totalorder %s1905_s3, %s1905_s3 }
  0x4a   :  { %p1912_p5 = por %p1911_p4, %p1910_p3 }
  0x4c   :  { %p1913_p6 = pnand %p1912_p5, %p1906_p2 }
  0x4e   :  { %1916 = shalt.err (!%p1913_p6)
}
  0x4f   :  { %114 = dma.hbm_to_vmem [thread:$0]  %s2139_s11, 2048, %s109_s22, [#allocation12], %s1956_s9, %s1956_s9, %s1957_s16  }
  0x50   :  { %1937 = dma.done.wait [#allocation3], 64  }
  0x51   :  { %1938 = vsyncadd [#allocation3], 4294967232 }
  0x52   :  { %1939 = dma.done.wait [#allocation6], 9024  }
  0x53   :  { %1940 = vsyncadd [#allocation6], 4294958272 }
  0x54   :  { %1941 = dma.done.wait [#allocation9], 3072  }
  0x55   :  { %1942 = vsyncadd [#allocation9], 4294964224 }
  0x56   :  { %1943 = dma.done.wait [#allocation12], 3072  }
  0x57   :  { %1944 = vsyncadd [#allocation12], 4294964224  ;;  %v1960_v0 = vmov 0.0   ;;  %v1961_v1 = vmov 0   ;;  %vm1962_vm0 = vmmov 0   ;;  %vm311_vm1 = vcmask 1043456  }
  0x58   :  { %1541 = vmatprep.subr.bf16.mxu1 %v1960_v0  ;;  %353 = vmatprep.mubr.bf16.mxu0 %v1961_v1  ;;  %v168_v2 = vld [vmem:[#allocation5 + $0xa8] sm:$0xff]  ;;  %v1620_v3 = vld [vmem:[#allocation5 + $0xb0] ss:$0 sps:$4 sm:$0xff]   ;;  %v1621_v6 = vld [vmem:[#allocation5 + $0x94] ss:$12 sps:$4 sm:$0xff]   ;;  %vm307_vm2 = vcmask 982016  }
  0x59   :  { %1557 = vmatprep.mubr.msk.bf16.mxu1 %vm1962_vm0, %v1960_v0  ;;  %v1388_v4 = vcombine.high %v168_v2, %v168_v2  ;;  %v1387_v5 = vcombine.low %v168_v2, %v168_v2  ;;  %v319_v7 = vsel %vm311_vm1, %v1620_v3, 0  ;;  %v1624_v9 = vld [vmem:[#allocation5 + $0x98] ss:$12 sps:$4 sm:$0xff]   ;;  %v1623_v10 = vld [vmem:[#allocation5 + $0x90] ss:$12 sps:$4 sm:$0xff]   ;;  %s1963_s14 = smov [#allocation14]  }
  0x5a   :  { %1542 = vmatpush3.bf16.msra.mxu1 %v319_v7  ;;  %v1625_v11 = vld [vmem:[#allocation5 + $0x7c] ss:$12 sps:$4 sm:$0xff]   ;;  %v1628_v12 = vld [vmem:[#allocation5 + $0x80] ss:$12 sps:$4 sm:$0xff]   ;;  %v1627_v13 = vld [vmem:[#allocation5 + $0x78] ss:$12 sps:$4 sm:$0xff]  }
  0x5b   :  { %1390 = vmatprep.subr.msk.bf16.mxu0 %vm311_vm1, %v1388_v4  ;;  %v313_v8 = vsel %vm311_vm1, %v1387_v5, 0  ;;  %1543 = vmatprep.subr.bf16.mxu1 %v1960_v0  ;;  %v1629_v14 = vld [vmem:[#allocation5 + $0x64] ss:$12 sps:$4 sm:$0xff]   ;;  %v1632_v15 = vld [vmem:[#allocation5 + $0x68] ss:$12 sps:$4 sm:$0xff]   ;;  %s1354_s15 = sshll.u32 %s1963_s14, 4  ;;  %s1355_s15 = int_to_ptr.vmem [resolvable:$true] %s1354_s15 }
  0x5c   :  { %322 = vmatpush1.bf16.msra.mxu0 %v313_v8  ;;  %v1631_v16 = vld [vmem:[#allocation5 + $0x60] ss:$12 sps:$4 sm:$0xff]   ;;  %v1636_v18 = vld [vmem:[#allocation5 + $0x50] ss:$12 sps:$4 sm:$0xff]   ;;  %v1635_v19 = vld [vmem:[#allocation5 + $0x48] ss:$12 sps:$4 sm:$0xff]   ;;  %p1922_p8 = scmp.lt.s32.totalorder %s1355_s15, %s1355_s15 }
  0x5d   :  { %323 = vmatprep.subr.bf16.mxu0 %v1621_v6  ;;  %v1633_v17 = vld [vmem:[#allocation5 + $0x4c] ss:$12 sps:$4 sm:$0xff]   ;;  %v1637_v20 = vld [vmem:[#allocation5 + $0x34] ss:$12 sps:$4 sm:$0xff]   ;;  %v1639_v22 = vld [vmem:[#allocation5 + $0x30] ss:$12 sps:$4 sm:$0xff]  }
  0x5e   :  { %1544 = vmatpush3.bf16.msra.mxu1 %v1624_v9  ;;  %v1640_v21 = vld [vmem:[#allocation5 + $0x38] ss:$12 sps:$4 sm:$0xff]   ;;  %v1641_v23 = vld [vmem:[#allocation5 + $0x1c] ss:$12 sps:$4 sm:$0xff]   ;;  %v1644_v24 = vld [vmem:[#allocation5 + $0x20] ss:$12 sps:$4 sm:$0xff]  }
  0x5f   :  { %1545 = vmatprep.subr.bf16.mxu1 %v1960_v0  ;;  %v1643_v25 = vld [vmem:[#allocation5 + $0x18] ss:$12 sps:$4 sm:$0xff]   ;;  %v1648_v27 = vld [vmem:[#allocation5 + $0x8] ss:$12 sps:$4 sm:$0xff]   ;;  %v1647_v28 = vld [vmem:[#allocation5] ss:$12 sps:$4 sm:$0xff]  }
  0x60   :  { %324 = vmatpush1.bf16.msra.mxu0 %v1623_v10  ;;  %v1645_v26 = vld [vmem:[#allocation5 + $0x4] ss:$12 sps:$4 sm:$0xff]   ;;  %v139_v31 = vld [vmem:[#allocation2] sm:$0xf]  ;;  %v1681_v34 = vld [vmem:[#allocation7 + $0x164] ss:$8 sps:$4 sm:$0xff]  }
  0x61   :  { %325 = vmatprep.subr.bf16.mxu0 %v1625_v11  ;;  %v1651_v29 = vld [vmem:[#allocation7 + $0x74] ss:$8 sps:$4 sm:$0xff]   ;;  %v1649_v32 = vld [vmem:[#allocation7 + $0x70] ss:$8 sps:$4 sm:$0xff]   ;;  %v1654_v35 = vld [vmem:[#allocation7 + $0x64] ss:$8 sps:$4 sm:$0xff]  }
  0x62   :  { %1546 = vmatpush3.bf16.msra.mxu1 %v1628_v12  ;;  %v1675_v30 = vld [vmem:[#allocation7 + $0x174] ss:$8 sps:$4 sm:$0xff]   ;;  %v1673_v33 = vld [vmem:[#allocation7 + $0x170] ss:$8 sps:$4 sm:$0xff]   ;;  %v1652_v36 = vld [vmem:[#allocation7 + $0x60] ss:$8 sps:$4 sm:$0xff]  }
  0x63   :  { %1547 = vmatprep.subr.bf16.mxu1 %v1960_v0  ;;  %v1679_v37 = vld [vmem:[#allocation7 + $0x160] ss:$8 sps:$4 sm:$0xff]   ;;  %v1687_v38 = vld [vmem:[#allocation7 + $0x154] ss:$8 sps:$4 sm:$0xff]   ;;  %v1655_v40 = vld [vmem:[#allocation7 + $0x50] ss:$8 sps:$4 sm:$0xff]  }
  0x64   :  { %326 = vmatpush1.bf16.msra.mxu0 %v1627_v13  ;;  %v1657_v39 = vld [vmem:[#allocation7 + $0x54] ss:$8 sps:$4 sm:$0xff]   ;;  %v1685_v41 = vld [vmem:[#allocation7 + $0x150] ss:$8 sps:$4 sm:$0xff]   ;;  %v1693_v42 = vld [vmem:[#allocation7 + $0x144] ss:$8 sps:$4 sm:$0xff]  }
  0x65   :  { %327 = vmatprep.subr.bf16.mxu0 %v1629_v14  ;;  %v1660_v43 = vld [vmem:[#allocation7 + $0x44] ss:$8 sps:$4 sm:$0xff]   ;;  %v1658_v44 = vld [vmem:[#allocation7 + $0x40] ss:$8 sps:$4 sm:$0xff]   ;;  %v1699_v46 = vld [vmem:[#allocation7 + $0x134] ss:$8 sps:$4 sm:$0xff]  }
  0x66   :  { %1548 = vmatpush3.bf16.msra.mxu1 %v1632_v15  ;;  %v1691_v45 = vld [vmem:[#allocation7 + $0x140] ss:$8 sps:$4 sm:$0xff]   ;;  %v1663_v47 = vld [vmem:[#allocation7 + $0x34] ss:$8 sps:$4 sm:$0xff]   ;;  %v1697_v48 = vld [vmem:[#allocation7 + $0x130] ss:$8 sps:$4 sm:$0xff]  }
  0x67   :  { %1549 = vmatprep.subr.bf16.mxu1 %v1960_v0  ;;  %v1661_v49 = vld [vmem:[#allocation7 + $0x30] ss:$8 sps:$4 sm:$0xff]   ;;  %v1705_v50 = vld [vmem:[#allocation7 + $0x124] ss:$8 sps:$4 sm:$0xff]   ;;  %v1703_v52 = vld [vmem:[#allocation7 + $0x120] ss:$8 sps:$4 sm:$0xff]  }
  0x68   :  { %328 = vmatpush1.bf16.msra.mxu0 %v1631_v16  ;;  %v1666_v51 = vld [vmem:[#allocation7 + $0x24] ss:$8 sps:$4 sm:$0xff]   ;;  %v1664_v53 = vld [vmem:[#allocation7 + $0x20] ss:$8 sps:$4 sm:$0xff]   ;;  %v1711_v54 = vld [vmem:[#allocation7 + $0x114] ss:$8 sps:$4 sm:$0xff]  }
  0x69   :  { %329 = vmatprep.subr.bf16.mxu0 %v1633_v17  ;;  %v1669_v55 = vld [vmem:[#allocation7 + $0x14] ss:$8 sps:$4 sm:$0xff]   ;;  %v1709_v56 = vld [vmem:[#allocation7 + $0x110] ss:$8 sps:$4 sm:$0xff]   ;;  %v1672_v58 = vld [vmem:[#allocation7 + $0x4] ss:$8 sps:$4 sm:$0xff]   ;;  %v172_v17 = vlaneseq }
  0x6a   :  { %1550 = vmatpush3.bf16.msra.mxu1 %v1636_v18  ;;  %v1667_v57 = vld [vmem:[#allocation7 + $0x10] ss:$8 sps:$4 sm:$0xff]   ;;  %v1670_v59 = vld [vmem:[#allocation7] ss:$8 sps:$4 sm:$0xff]   ;;  %v1678_v60 = vld [vmem:[#allocation7 + $0xf4] ss:$8 sps:$4 sm:$0xff]  }
  0x6b   :  { %1551 = vmatprep.subr.bf16.mxu1 %v1960_v0  ;;  %v1676_v61 = vld [vmem:[#allocation7 + $0xf0] ss:$8 sps:$4 sm:$0xff]   ;;  %v1684_v62 = vld [vmem:[#allocation7 + $0xe4] ss:$8 sps:$4 sm:$0xff]   ;;  %v1682_v63 = vld [vmem:[#allocation7 + $0xe0] ss:$8 sps:$4 sm:$0xff]  }
  0x6c   :  { %330 = vmatpush1.bf16.msra.mxu0 %v1635_v19  ;;  %v1690_v2 = vld [vmem:[#allocation7 + $0xd4] ss:$8 sps:$4 sm:$0xff]   ;;  %v1688_v3 = vld [vmem:[#allocation7 + $0xd0] ss:$8 sps:$4 sm:$0xff]   ;;  %v1696_v4 = vld [vmem:[#allocation7 + $0xc4] ss:$8 sps:$4 sm:$0xff]  }
  0x6d   :  { %331 = vmatprep.subr.bf16.mxu0 %v1637_v20  ;;  %v1694_v5 = vld [vmem:[#allocation7 + $0xc0] ss:$8 sps:$4 sm:$0xff]   ;;  %v1702_v6 = vld [vmem:[#allocation7 + $0xb4] ss:$8 sps:$4 sm:$0xff]   ;;  %v1700_v7 = vld [vmem:[#allocation7 + $0xb0] ss:$8 sps:$4 sm:$0xff]  }
  0x6e   :  { %1552 = vmatpush3.bf16.msra.mxu1 %v1640_v21  ;;  %v1708_v8 = vld [vmem:[#allocation7 + $0xa4] ss:$8 sps:$4 sm:$0xff]   ;;  %v1706_v9 = vld [vmem:[#allocation7 + $0xa0] ss:$8 sps:$4 sm:$0xff]   ;;  %v1714_v10 = vld [vmem:[#allocation7 + $0x94] ss:$8 sps:$4 sm:$0xff]  }
  0x6f   :  { %1553 = vmatprep.subr.bf16.mxu1 %v1960_v0  ;;  %v1717_v11 = vld [vmem:[#allocation7 + $0x104] ss:$8 sps:$4 sm:$0xff]   ;;  %v1712_v12 = vld [vmem:[#allocation7 + $0x90] ss:$8 sps:$4 sm:$0xff]   ;;  %v1715_v13 = vld [vmem:[#allocation7 + $0x100] ss:$8 sps:$4 sm:$0xff]  }
  0x70   :  { %332 = vmatpush1.bf16.msra.mxu0 %v1639_v22  ;;  %v1720_v14 = vld [vmem:[#allocation7 + $0x84] ss:$8 sps:$4 sm:$0xff]   ;;  %v1718_v15 = vld [vmem:[#allocation7 + $0x80] ss:$8 sps:$4 sm:$0xff]   ;;  %v1721_v16 = vld [vmem:[#allocation8 + $0x78] sm:$0xff]   ;;  %v173_v18 = vshrl.u32 %v172_v17, 7 }
  0x71   :  { %333 = vmatprep.subr.bf16.mxu0 %v1641_v23  ;;  %v170_v20 = vld [vmem:[%s2130_s2] sm:$0x7] }
  0x72   :  { %1554 = vmatpush3.bf16.msra.mxu1 %v1644_v24  ;;  %v182_v19 = vsub.s32 2, %v173_v18  ;;  %v2080_v21 = vsub.s32 0, %v173_v18  ;;  %v2082_v22 = vsub.s32 1, %v173_v18 }
  0x73   :  { %1555 = vmatprep.subr.bf16.mxu1 %v1960_v0 }
  0x74   :  { %334 = vmatpush1.bf16.msra.mxu0 %v1643_v25  ;;  %v183_v23 = vrot.slane %v170_v20, %v182_v19  ;;  %v175_v24 = vrot.slane %v170_v20, %v2080_v21 }
  0x75   :  { %335 = vmatprep.subr.bf16.mxu0 %v1645_v26  ;;  %v179_v26 = vrot.slane %v170_v20, %v2082_v22  ;;  %v1742_v20 = vld [vmem:[#allocation10 + $0x10] sm:$0xff]  }
  0x76   :  { %1556 = vmatpush3.bf16.msra.mxu1 %v1648_v27 }
  0x77   :  { %749 = vmatprep.subr.bf16.mxu1 %v1675_v30 }
  0x78   :  { %336 = vmatpush1.bf16.msra.mxu0 %v1647_v28 }
  0x79   :  { %708 = vmatprep.subr.bf16.mxu0 %v1651_v29  ;;  %1558 = vmatmul.mubr.msk.bf16.vlgmr.msra.gmra.mxu1 %vm307_vm2, %v139_v31 }
  0x7a   :  { %750 = vmatpush1.bf16.msra.mxu1 %v1673_v33  ;;  %781 = vmatprep.mubr.bf16.mxu1 %v1961_v1 }
  0x7b   :  { %1391 = vmatmul.mubr.msk.bf16.vlgmr.msra.gmra.mxu0 %vm307_vm2, %v139_v31  ;;  %751 = vmatprep.subr.bf16.mxu1 %v1681_v34 }
  0x7c   :  { %709 = vmatpush1.bf16.msra.mxu0 %v1649_v32 }
  0x7d   :  { %710 = vmatprep.subr.bf16.mxu0 %v1654_v35  ;;  %v1722_v35 = vld [vmem:[#allocation8 + $0x38] sm:$0xff]  }
  0x7e   :  { %752 = vmatpush1.bf16.msra.mxu1 %v1679_v37 }
  0x7f   :  { %753 = vmatprep.subr.bf16.mxu1 %v1687_v38 }
  0x80   :  { %711 = vmatpush1.bf16.msra.mxu0 %v1652_v36 }
  0x81   :  { %712 = vmatprep.subr.bf16.mxu0 %v1657_v39  ;;  %v1723_v39 = vld [vmem:[#allocation8 + $0x70] sm:$0xff]  }
  0x82   :  { %754 = vmatpush1.bf16.msra.mxu1 %v1685_v41 }
  0x83   :  { %755 = vmatprep.subr.bf16.mxu1 %v1693_v42 }
  0x84   :  { %713 = vmatpush1.bf16.msra.mxu0 %v1655_v40 }
  0x85   :  { %714 = vmatprep.subr.bf16.mxu0 %v1660_v43 }
  0x86   :  { %756 = vmatpush1.bf16.msra.mxu1 %v1691_v45 }
  0x87   :  { %757 = vmatprep.subr.bf16.mxu1 %v1699_v46  ;;  %v1725_v46 = vld [vmem:[#allocation8 + $0x68] sm:$0xff]  }
  0x88   :  { %715 = vmatpush1.bf16.msra.mxu0 %v1658_v44  ;;  %v1724_v44 = vld [vmem:[#allocation8 + $0x30] sm:$0xff]  }
  0x89   :  { %716 = vmatprep.subr.bf16.mxu0 %v1663_v47  ;;  %v1726_v47 = vld [vmem:[#allocation8 + $0x28] sm:$0xff]  }
  0x8a   :  { %758 = vmatpush1.bf16.msra.mxu1 %v1697_v48  ;;  %v1727_v48 = vld [vmem:[#allocation8 + $0x60] sm:$0xff]  }
  0x8b   :  { %759 = vmatprep.subr.bf16.mxu1 %v1705_v50  ;;  %v1729_v50 = vld [vmem:[#allocation8 + $0x58] sm:$0xff]  }
  0x8c   :  { %717 = vmatpush1.bf16.msra.mxu0 %v1661_v49  ;;  %v1728_v49 = vld [vmem:[#allocation8 + $0x20] sm:$0xff]  }
  0x8d   :  { %718 = vmatprep.subr.bf16.mxu0 %v1666_v51  ;;  %v1730_v51 = vld [vmem:[#allocation8 + $0x18] sm:$0xff]  }
  0x8e   :  { %760 = vmatpush1.bf16.msra.mxu1 %v1703_v52  ;;  %v1731_v52 = vld [vmem:[#allocation8 + $0x50] sm:$0xff]  }
  0x8f   :  { %761 = vmatprep.subr.bf16.mxu1 %v1711_v54  ;;  %v1733_v54 = vld [vmem:[#allocation8 + $0x48] sm:$0xff]  }
  0x90   :  { %719 = vmatpush1.bf16.msra.mxu0 %v1664_v53  ;;  %v1732_v53 = vld [vmem:[#allocation8 + $0x10] sm:$0xff]  }
  0x91   :  { %720 = vmatprep.subr.bf16.mxu0 %v1669_v55  ;;  %v1734_v55 = vld [vmem:[#allocation8 + $0x8] sm:$0xff]  }
  0x92   :  { %762 = vmatpush1.bf16.msra.mxu1 %v1709_v56  ;;  %v1735_v56 = vld [vmem:[#allocation8 + $0x40] sm:$0xff]  }
  0x93   :  { %763 = vmatprep.subr.bf16.mxu1 %v1717_v11 }
  0x94   :  { %721 = vmatpush1.bf16.msra.mxu0 %v1667_v57  ;;  %v1736_v57 = vld [vmem:[#allocation8] sm:$0xff]  }
  0x95   :  { %722 = vmatprep.subr.bf16.mxu0 %v1672_v58  ;;  %v1737_v58 = vld [vmem:[#allocation10 + $0x38] sm:$0xff]  }
  0x96   :  { %764 = vmatpush1.bf16.msra.mxu1 %v1715_v13 }
  0x97   :  { %1501 = vmatprep.subr.bf16.mxu1 %v1721_v16 }
  0x98   :  { %723 = vmatpush1.bf16.msra.mxu0 %v1670_v59  ;;  %v1738_v59 = vld [vmem:[#allocation10 + $0x30] sm:$0xff]  }
  0x99   :  { %724 = vmatprep.subr.bf16.mxu0 %v1678_v60  ;;  %v1739_v60 = vld [vmem:[#allocation10 + $0x28] sm:$0xff]  }
  0x9c   :  { %725 = vmatpush2.bf16.msra.mxu0 %v1676_v61  ;;  %v1740_v61 = vld [vmem:[#allocation10 + $0x20] sm:$0xff]  }
  0x9d   :  { %726 = vmatprep.subr.bf16.mxu0 %v1684_v62  ;;  %v1741_v62 = vld [vmem:[#allocation10 + $0x18] sm:$0xff]  }
  0xa0   :  { %727 = vmatpush2.bf16.msra.mxu0 %v1682_v63  ;;  %v456_v63 = vld [vmem:[%s2132_s4] sm:$0x3] }
  0xa1   :  { %728 = vmatprep.subr.bf16.mxu0 %v1690_v2 }
  0xa4   :  { %729 = vmatpush2.bf16.msra.mxu0 %v1688_v3  ;;  %v461_v3 = vrot.slane %v456_v63, %v2080_v21 }
  0xa5   :  { %730 = vmatprep.subr.bf16.mxu0 %v1696_v4 }
  0xa8   :  { %731 = vmatpush2.bf16.msra.mxu0 %v1694_v5  ;;  %v465_v5 = vrot.slane %v456_v63, %v2082_v22  ;;  %v1774_v63 = vld [vmem:[#allocation13] ss:$8 sps:$4 sm:$0xff]  }
  0xa9   :  { %732 = vmatprep.subr.bf16.mxu0 %v1702_v6 }
  0xac   :  { %733 = vmatpush2.bf16.msra.mxu0 %v1700_v7 }
  0xad   :  { %734 = vmatprep.subr.bf16.mxu0 %v1708_v8 }
  0xb0   :  { %735 = vmatpush2.bf16.msra.mxu0 %v1706_v9 }
  0xb1   :  { %736 = vmatprep.subr.bf16.mxu0 %v1714_v10 }
  0xb4   :  { %737 = vmatpush2.bf16.msra.mxu0 %v1712_v12 }
  0xb5   :  { %738 = vmatprep.subr.bf16.mxu0 %v1720_v14 }
  0xb8   :  { %739 = vmatpush2.bf16.msra.mxu0 %v1718_v15 }
  0xb9   :  { %1561 = vmatprep.subr.bf16.mxu0 %v1960_v0 }
 0x139   :  { %v396_v25 = vpop.f32.mrf.mxu1 }
 0x13a   :  { %v397_v28 = vadd.f32 %v396_v25, %v183_v23  ;;  %v1743_v23 = vld [vmem:[#allocation10 + $0x8] sm:$0xff]   ;;  %v1745_v25 = vld [vmem:[#allocation11 + $0x38] sm:$0xff]  }
 0x13b   :  { %v355_v27 = vpop.f32.mrf.mxu0  ;;  %v1559_v30 = vpop.f32.mrf.mxu1 }
 0x13c   :  { %v356_v29 = vadd.f32 %v355_v27, %v175_v24  ;;  %v404_v31 = vmax.f32 %v397_v28, 0.0  ;;  %v1744_v24 = vld [vmem:[#allocation10] sm:$0xff]   ;;  %v1747_v27 = vld [vmem:[#allocation11 + $0x28] sm:$0xff]   ;;  %v1750_v30 = vld [vmem:[#allocation11 + $0x10] sm:$0xff]  }
 0x13d   :  { %v357_v32 = vpop.f32.mrf.mxu0  ;;  %v399_v34 = vpop.f32.mrf.mxu1  ;;  %v1748_v28 = vld [vmem:[#allocation11 + $0x20] sm:$0xff]  }
 0x13e   :  { %v358_v33 = vadd.f32 %v357_v32, %v179_v26  ;;  %v402_v36 = vmax.f32 %v356_v29, 0.0  ;;  %v407_v37 = vpack.c.bf16 %v404_v31, %v404_v31  ;;  %v1746_v26 = vld [vmem:[#allocation11 + $0x30] sm:$0xff]   ;;  %v1749_v29 = vld [vmem:[#allocation11 + $0x18] sm:$0xff]   ;;  %v1441_v32 = vld [vmem:[%s2134_s6] ss:$0 sm:$0xff] }
 0x13f   :  { %v359_v38 = vpop.f32.mrf.mxu0  ;;  %v1560_v41 = vpop.f32.mrf.mxu1 }
 0x140   :  { %v403_v40 = vmax.f32 %v358_v33, 0.0  ;;  %782 = vmatmul.mubr.bf16.vlgmr.msra.gmra.mxu1 %v407_v37  ;;  %v405_v45 = vpack.c.bf16 %v402_v36, %v402_v36  ;;  %v1752_v41 = vld [vmem:[#allocation11] sm:$0xff]  }
 0x141   :  { %v360_v42 = vpop.f32.mrf.mxu0  ;;  %1502 = vmatpush3.bf16.msra.mxu1 %v1722_v35 }
 0x142   :  { %v406_v43 = vpack.c.bf16 %v403_v40, %v403_v40  ;;  %1503 = vmatprep.subr.bf16.mxu1 %v1723_v39  ;;  %v1751_v40 = vld [vmem:[#allocation11 + $0x8] sm:$0xff]   ;;  %v1753_v42 = vld [vmem:[#allocation13 + $0x70] ss:$8 sps:$4 sm:$0xff]  }
 0x144   :  { %740 = vmatprep.mubr.bf16.mxu0 %v406_v43  ;;  %v1755_v43 = vld [vmem:[#allocation13 + $0x74] ss:$8 sps:$4 sm:$0xff]  }
 0x145   :  { %741 = vmatmul.mubr.bf16.vlgmr.msra.gmra.mxu0 %v405_v45  ;;  %1504 = vmatpush3.bf16.msra.mxu1 %v1724_v44  ;;  %v1758_v44 = vld [vmem:[#allocation13 + $0x64] ss:$8 sps:$4 sm:$0xff]   ;;  %v1756_v45 = vld [vmem:[#allocation13 + $0x60] ss:$8 sps:$4 sm:$0xff]  }
 0x146   :  { %1577 = vmatprep.mubr.msk.bf16.mxu0 %vm1962_vm0, %v1960_v0  ;;  %1505 = vmatprep.subr.bf16.mxu1 %v1725_v46  ;;  %v1761_v46 = vld [vmem:[#allocation13 + $0x54] ss:$8 sps:$4 sm:$0xff]  }
 0x147   :  { %1562 = vmatpush3.bf16.msra.mxu0 %v1737_v58 }
 0x148   :  { %1563 = vmatprep.subr.bf16.mxu0 %v1960_v0 }
 0x149   :  { %1506 = vmatpush3.bf16.msra.mxu1 %v1726_v47  ;;  %v1759_v47 = vld [vmem:[#allocation13 + $0x50] ss:$8 sps:$4 sm:$0xff]  }
 0x14a   :  { %1507 = vmatprep.subr.bf16.mxu1 %v1727_v48  ;;  %v1764_v48 = vld [vmem:[#allocation13 + $0x44] ss:$8 sps:$4 sm:$0xff]  }
 0x14b   :  { %1564 = vmatpush3.bf16.msra.mxu0 %v1738_v59 }
 0x14c   :  { %1565 = vmatprep.subr.bf16.mxu0 %v1960_v0 }
 0x14d   :  { %1508 = vmatpush3.bf16.msra.mxu1 %v1728_v49  ;;  %v1767_v49 = vld [vmem:[#allocation13 + $0x34] ss:$8 sps:$4 sm:$0xff]  }
 0x14e   :  { %1509 = vmatprep.subr.bf16.mxu1 %v1729_v50  ;;  %v1770_v50 = vld [vmem:[#allocation13 + $0x24] ss:$8 sps:$4 sm:$0xff]  }
 0x14f   :  { %1566 = vmatpush3.bf16.msra.mxu0 %v1739_v60 }
 0x150   :  { %1567 = vmatprep.subr.bf16.mxu0 %v1960_v0 }
 0x151   :  { %1510 = vmatpush3.bf16.msra.mxu1 %v1730_v51  ;;  %v1768_v51 = vld [vmem:[#allocation13 + $0x20] ss:$8 sps:$4 sm:$0xff]  }
 0x152   :  { %1511 = vmatprep.subr.bf16.mxu1 %v1731_v52  ;;  %v1773_v52 = vld [vmem:[#allocation13 + $0x14] ss:$8 sps:$4 sm:$0xff]  }
 0x153   :  { %1568 = vmatpush3.bf16.msra.mxu0 %v1740_v61 }
 0x154   :  { %1569 = vmatprep.subr.bf16.mxu0 %v1960_v0 }
 0x155   :  { %1512 = vmatpush3.bf16.msra.mxu1 %v1732_v53  ;;  %v1771_v53 = vld [vmem:[#allocation13 + $0x10] ss:$8 sps:$4 sm:$0xff]  }
 0x156   :  { %1513 = vmatprep.subr.bf16.mxu1 %v1733_v54  ;;  %v1458_v54 = vld [vmem:[%s2136_s8] ss:$0 sm:$0xff] }
 0x157   :  { %1570 = vmatpush3.bf16.msra.mxu0 %v1741_v62  ;;  %v1776_v62 = vld [vmem:[#allocation13 + $0x4] ss:$8 sps:$4 sm:$0xff]  }
 0x158   :  { %1571 = vmatprep.subr.bf16.mxu0 %v1960_v0 }
 0x159   :  { %1514 = vmatpush3.bf16.msra.mxu1 %v1734_v55 }
 0x15a   :  { %1515 = vmatprep.subr.bf16.mxu1 %v1735_v56 }
 0x15b   :  { %1572 = vmatpush3.bf16.msra.mxu0 %v1742_v20 }
 0x15c   :  { %1573 = vmatprep.subr.bf16.mxu0 %v1960_v0 }
 0x15d   :  { %1516 = vmatpush3.bf16.msra.mxu1 %v1736_v57 }
 0x15e   :  { %1581 = vmatprep.subr.bf16.mxu1 %v1960_v0 }
 0x15f   :  { %1574 = vmatpush3.bf16.msra.mxu0 %v1743_v23 }
 0x160   :  { %1575 = vmatprep.subr.bf16.mxu0 %v1960_v0 }
 0x163   :  { %1576 = vmatpush3.bf16.msra.mxu0 %v1744_v24 }
 0x164   :  { %1305 = vmatprep.subr.bf16.mxu0 %v1755_v43 }
 0x200   :  { %v783_v2 = vpop.f32.mrf.mxu1 }
 0x202   :  { %v785_v4 = vpop.f32.mrf.mxu1 }
 0x204   :  { %v787_v7 = vpop.f32.mrf.mxu1 }
 0x205   :  { %v742_v6 = vpop.f32.mrf.mxu0 }
 0x206   :  { %v743_v8 = vadd.f32 %v742_v6, %v461_v3  ;;  %v788_v10 = vpop.f32.mrf.mxu1 }
 0x207   :  { %v744_v9 = vpop.f32.mrf.mxu0  ;;  %v1213_v10 = vld [vmem:[%s2140_s12] sm:$0x3] }
 0x208   :  { %v784_v11 = vadd.f32 %v783_v2, %v743_v8  ;;  %v745_v12 = vadd.f32 %v744_v9, %v465_v5  ;;  %v1467_v2 = vld [vmem:[%s2138_s10] ss:$0 sm:$0xff]  ;;  %s1917_s10 = scalar_lea.vmem %s1355_s15, 256 }
 0x209   :  { %v746_v13 = vpop.f32.mrf.mxu0  ;;  %p1918_p7 = scmp.ne.s32.totalorder %s1355_s15, %s1917_s10  ;;  %p1923_p9 = scmp.lt.s32.totalorder %s1917_s10, %s1917_s10 }
 0x20a   :  { %v786_v14 = vadd.f32 %v785_v4, %v745_v12  ;;  %v790_v15 = vmax.f32 %v784_v11, 0.0  ;;  %v1218_v11 = vrot.slane %v1213_v10, %v2080_v21  ;;  %v1222_v12 = vrot.slane %v1213_v10, %v2082_v22 }
 0x20b   :  { %v747_v16 = vpop.f32.mrf.mxu0  ;;  %p1924_p10 = por %p1923_p9, %p1922_p8 }
 0x20c   :  { %v791_v17 = vmax.f32 %v786_v14, 0.0  ;;  %v792_v19 = vpack.c.bf16 %v790_v15, %v790_v15 }
 0x20d   :  { %p1925_p11 = pnand %p1924_p10, %p1918_p7 }
 0x20e   :  { %v793_v18 = vpack.c.bf16 %v791_v17, %v791_v17 }
 0x210   :  { %961 = vmatprep.mubr.bf16.mxu1 %v793_v18 }
 0x211   :  { %962 = vmatmul.mubr.bf16.vlgmr.msra.gmra.mxu1 %v792_v19 }
 0x212   :  { %1597 = vmatprep.mubr.msk.bf16.mxu1 %vm1962_vm0, %v1960_v0  ;;  %1582 = vmatpush3.bf16.msra.mxu1 %v1745_v25 }
 0x213   :  { %1583 = vmatprep.subr.bf16.mxu1 %v1960_v0 }
 0x216   :  { %1584 = vmatpush3.bf16.msra.mxu1 %v1746_v26 }
 0x217   :  { %1585 = vmatprep.subr.bf16.mxu1 %v1960_v0 }
 0x21a   :  { %1586 = vmatpush3.bf16.msra.mxu1 %v1747_v27 }
 0x21b   :  { %1587 = vmatprep.subr.bf16.mxu1 %v1960_v0 }
 0x21e   :  { %1588 = vmatpush3.bf16.msra.mxu1 %v1748_v28 }
 0x21f   :  { %1589 = vmatprep.subr.bf16.mxu1 %v1960_v0 }
 0x222   :  { %1590 = vmatpush3.bf16.msra.mxu1 %v1749_v29 }
 0x223   :  { %1591 = vmatprep.subr.bf16.mxu1 %v1960_v0 }
 0x226   :  { %1592 = vmatpush3.bf16.msra.mxu1 %v1750_v30 }
 0x227   :  { %1593 = vmatprep.subr.bf16.mxu1 %v1960_v0 }
 0x22a   :  { %1594 = vmatpush3.bf16.msra.mxu1 %v1751_v40 }
 0x22b   :  { %1595 = vmatprep.subr.bf16.mxu1 %v1960_v0  ;;  %v1765_v0 = vld [vmem:[#allocation13 + $0x30] ss:$8 sps:$4 sm:$0xff]  }
 0x22e   :  { %1596 = vmatpush3.bf16.msra.mxu1 %v1752_v41 }
 0x2d1   :  { %v1517_v31 = vpop.f32.mrf.mxu1 }
 0x2d3   :  { %v1518_v33 = vpop.f32.mrf.mxu1 }
 0x2d4   :  { %v1519_v34 = vadd.f32 %v1518_v33, %v1517_v31 }
 0x2d5   :  { %v1520_v35 = vpop.f32.mrf.mxu1 }
 0x2d6   :  { %v964_v36 = vadd.f32 %v1519_v34, %v1441_v32 }
 0x2d7   :  { %v1521_v37 = vpop.f32.mrf.mxu1 }
 0x2d8   :  { %v969_v38 = vmax.f32 %v964_v36, 0.0 }
 0x2da   :  { %v970_v39 = vpack.c.bf16 %v969_v38, %v969_v38 }
 0x2dc   :  { %1578 = vmatmul.mubr.bf16.vlgmr.msra.gmra.mxu0 %v970_v39 }
 0x2dd   :  { %1337 = vmatprep.mubr.bf16.mxu0 %v1961_v1  ;;  %1306 = vmatpush1.bf16.msra.mxu0 %v1753_v42  ;;  %v1762_v1 = vld [vmem:[#allocation13 + $0x40] ss:$8 sps:$4 sm:$0xff]  }
 0x2de   :  { %1307 = vmatprep.subr.bf16.mxu0 %v1758_v44 }
 0x2e1   :  { %1308 = vmatpush1.bf16.msra.mxu0 %v1756_v45 }
 0x2e2   :  { %1309 = vmatprep.subr.bf16.mxu0 %v1761_v46 }
 0x2e5   :  { %1310 = vmatpush1.bf16.msra.mxu0 %v1759_v47 }
 0x2e6   :  { %1311 = vmatprep.subr.bf16.mxu0 %v1764_v48 }
 0x2e9   :  { %1312 = vmatpush1.bf16.msra.mxu0 %v1762_v1 }
 0x2ea   :  { %1313 = vmatprep.subr.bf16.mxu0 %v1767_v49 }
 0x2ed   :  { %1314 = vmatpush1.bf16.msra.mxu0 %v1765_v0 }
 0x2ee   :  { %1315 = vmatprep.subr.bf16.mxu0 %v1770_v50 }
 0x2f1   :  { %1316 = vmatpush1.bf16.msra.mxu0 %v1768_v51 }
 0x2f2   :  { %1317 = vmatprep.subr.bf16.mxu0 %v1773_v52 }
 0x2f5   :  { %1318 = vmatpush1.bf16.msra.mxu0 %v1771_v53 }
 0x2f6   :  { %1319 = vmatprep.subr.bf16.mxu0 %v1776_v62 }
 0x2f9   :  { %1320 = vmatpush1.bf16.msra.mxu0 %v1774_v63 }
 0x39c   :  { %v1076_v55 = vpop.f32.mrf.mxu0 }
 0x39d   :  { %v1077_v56 = vadd.f32 %v1458_v54, %v1076_v55 }
 0x39e   :  { %v1579_v57 = vpop.f32.mrf.mxu0 }
 0x39f   :  { %v1082_v58 = vmax.f32 %v1077_v56, 0.0 }
 0x3a0   :  { %v1079_v59 = vpop.f32.mrf.mxu0 }
 0x3a1   :  { %v1083_v60 = vpack.c.bf16 %v1082_v58, %v1082_v58 }
 0x3a2   :  { %v1580_v61 = vpop.f32.mrf.mxu0 }
 0x3a3   :  { %1598 = vmatmul.mubr.bf16.vlgmr.msra.gmra.mxu1 %v1083_v60 }
 0x463   :  { %v1189_v3 = vpop.f32.mrf.mxu1 }
 0x464   :  { %v1190_v4 = vadd.f32 %v1467_v2, %v1189_v3 }
 0x465   :  { %v1599_v5 = vpop.f32.mrf.mxu1 }
 0x466   :  { %v1195_v6 = vmax.f32 %v1190_v4, 0.0 }
 0x467   :  { %v1192_v7 = vpop.f32.mrf.mxu1 }
 0x468   :  { %v1196_v8 = vpack.c.bf16 %v1195_v6, %v1195_v6 }
 0x469   :  { %v1600_v9 = vpop.f32.mrf.mxu1 }
 0x46a   :  { %1338 = vmatmul.mubr.bf16.vlgmr.msra.gmra.mxu0 %v1196_v8 }
 0x52a   :  { %v1339_v13 = vpop.f32.mrf.mxu0 }
 0x52b   :  { %v1340_v14 = vadd.f32 %v1339_v13, %v1218_v11 }
 0x52c   :  { %v1341_v15 = vpop.f32.mrf.mxu0 }
 0x52d   :  { %1346 = vst [vmem:[#allocation14] sm:$0xff] %v1340_v14  ;;  %v1342_v16 = vadd.f32 %v1341_v15, %v1222_v12 }
 0x52e   :  { %v1343_v17 = vpop.f32.mrf.mxu0 }
 0x52f   :  { %1347 = vst [vmem:[#allocation14 + $0x8] sm:$0xff] %v1342_v16 }
 0x530   :  { %v1344_v18 = vpop.f32.mrf.mxu0 }
 0x531   :  { %1928 = shalt.err (!%p1925_p11)
}
 0x532   :  { %1357 = dma.vmem_to_hbm [thread:$0]  %s1355_s15, 256, %s2141_s13, [#allocation4]  }
 0x533   :  { %1945 = dma.done.wait [#allocation4], 256  }
 0x534   :  { %1946 = vsyncadd [#allocation4], 4294967040 }
 0x535   :  { %1361 = vsyncpa [#allocation3], 1 }
 0x536   :  { %1362 = vsyncpa [#allocation6], 1 }
 0x537   :  { %1363 = vsyncpa [#allocation9], 1 }
 0x538   :  { %1364 = vsyncpa [#allocation12], 1 }
 0x539   :  { %1365 = vsyncpa [#allocation4], 1 }

// kernel: tpu_custom_call.1
= control target key start
LH: loop header
LB: loop body
LE: loop exit
PB: predicated region body
PF: predicated region fallthrough
CT: control target
= control target key end

     0   :  { %18 = vsyncpa [#allocation3], 0  ;;  %s2128_s0 = inlined_call_operand.hbm [shape: bf16[8,120], index: 0, kind: input, shape index: {}]   ;;  %s2129_s1 = inlined_call_operand.hbm [shape: bf16[120,384], index: 1, kind: input, shape index: {}]   ;;  %s2130_s2 = inlined_call_operand.vmem [shape: f32[1,384], index: 2, kind: input, shape index: {}]   ;;  %s2131_s3 = inlined_call_operand.hbm [shape: bf16[384,256], index: 3, kind: input, shape index: {}]   ;;  %s2132_s4 = inlined_call_operand.vmem [shape: f32[1,256], index: 4, kind: input, shape index: {}]   ;;  %s2133_s5 = inlined_call_operand.hbm [shape: bf16[256,128], index: 5, kind: input, shape index: {}]   ;;  %s2134_s6 = inlined_call_operand.vmem [shape: f32[1,128], index: 6, kind: input, shape index: {}]   ;;  %s2135_s7 = inlined_call_operand.hbm [shape: bf16[128,128], index: 7, kind: input, shape index: {}]   ;;  %s2136_s8 = inlined_call_operand.vmem [shape: f32[1,128], index: 8, kind: input, shape index: {}]   ;;  %s2137_s9 = inlined_call_operand.hbm [shape: bf16[128,128], index: 9, kind: input, shape index: {}]   ;;  %s2138_s10 = inlined_call_operand.vmem [shape: f32[1,128], index: 10, kind: input, shape index: {}]   ;;  %s2139_s11 = inlined_call_operand.hbm [shape: bf16[128,256], index: 11, kind: input, shape index: {}]   ;;  %s2140_s12 = inlined_call_operand.vmem [shape: f32[1,256], index: 12, kind: input, shape index: {}]   ;;  %s2141_s13 = inlined_call_operand.hbm [shape: f32[8,256], index: 13, kind: output, shape index: {}]  }
   0x1   :  { %19 = vsyncpa [#allocation6], 0 }
   0x2   :  { %20 = vsyncpa [#allocation9], 0 }
   0x3   :  { %21 = vsyncpa [#allocation12], 0 }
   0x4   :  { %22 = vsyncpa [#allocation4], 0  ;;  %s1947_s25 = smov [#allocation5]  }
   0x5   :  { %s38_s26 = sshll.u32 %s1947_s25, 4  ;;  %s39_s26 = int_to_ptr.vmem [resolvable:$true] %s38_s26 }
   0x6   :  { %s1785_s27 = scalar_lea.vmem %s39_s26, 2880  ;;  %p1790_p1 = scmp.lt.s32.totalorder %s39_s26, %s39_s26 }
   0x7   :  { %p1786_p0 = scmp.ne.s32.totalorder %s39_s26, %s1785_s27  ;;  %p1791_p2 = scmp.lt.s32.totalorder %s1785_s27, %s1785_s27 }
   0x9   :  { %p1792_p3 = por %p1791_p2, %p1790_p1 }
   0xb   :  { %p1793_p4 = pnand %p1792_p3, %p1786_p0 }
   0xd   :  { %1796 = shalt.err (!%p1793_p4)
}
   0xe   :  { %s1948_s28 = smov 192   ;;  %s1949_s29 = smov 12  }
   0xf   :  { %44 = dma.hbm_to_vmem [thread:$0]  %s2129_s1, 2880, %s39_s26, [#allocation6], %s1948_s28, %s1948_s28, %s1949_s29  }
  0x10   :  { %s1950_s15 = smov [#allocation8]  }
  0x11   :  { %s66_s16 = sshll.u32 %s1950_s15, 4  ;;  %s67_s16 = int_to_ptr.vmem [resolvable:$true] %s66_s16 }
  0x12   :  { %s1805_s17 = scalar_lea.vmem %s67_s16, 2048  ;;  %p1810_p6 = scmp.lt.s32.totalorder %s67_s16, %s67_s16 }
  0x13   :  { %p1806_p5 = scmp.ne.s32.totalorder %s67_s16, %s1805_s17  ;;  %p1811_p7 = scmp.lt.s32.totalorder %s1805_s17, %s1805_s17 }
  0x15   :  { %p1812_p8 = por %p1811_p7, %p1810_p6 }
  0x17   :  { %p1813_p9 = pnand %p1812_p8, %p1806_p5 }
  0x19   :  { %1816 = shalt.err (!%p1813_p9)
}
  0x1a   :  { %s1951_s18 = smov 64   ;;  %s1952_s19 = smov 4  }
  0x1b   :  { %72 = dma.hbm_to_vmem [thread:$0]  %s2133_s5, 2048, %s67_s16, [#allocation9], %s1951_s18, %s1951_s18, %s1952_s19  }
  0x1c   :  { %s1953_s1 = smov [#allocation11]   ;;  %s1954_s23 = smov [#allocation2]  }
  0x1d   :  { %s94_s22 = sshll.u32 %s1953_s1, 4  ;;  %s29_s24 = sshll.u32 %s1954_s23, 4  ;;  %s95_s22 = int_to_ptr.vmem [resolvable:$true] %s94_s22  ;;  %s30_s24 = int_to_ptr.vmem [resolvable:$true] %s29_s24 }
  0x1e   :  { %s1825_s25 = scalar_lea.vmem %s95_s22, 1024  ;;  %p1830_p11 = scmp.lt.s32.totalorder %s95_s22, %s95_s22 }
  0x1f   :  { %p1826_p10 = scmp.ne.s32.totalorder %s95_s22, %s1825_s25  ;;  %p1831_p12 = scmp.lt.s32.totalorder %s1825_s25, %s1825_s25 }
  0x21   :  { %p1832_p13 = por %p1831_p12, %p1830_p11 }
  0x23   :  { %p1833_p0 = pnand %p1832_p13, %p1826_p10 }
  0x25   :  { %1836 = shalt.err (!%p1833_p0)
}
  0x26   :  { %100 = dma.hbm_to_vmem [thread:$0]  %s2137_s9, 1024, %s95_s22, [#allocation12], %s1951_s18, %s1951_s18, %s1952_s19  }
  0x27   :  { %s1845_s5 = scalar_lea.vmem %s30_s24, 64  ;;  %p1850_p2 = scmp.lt.s32.totalorder %s30_s24, %s30_s24 }
  0x28   :  { %p1846_p1 = scmp.ne.s32.totalorder %s30_s24, %s1845_s5  ;;  %p1851_p3 = scmp.lt.s32.totalorder %s1845_s5, %s1845_s5 }
  0x2a   :  { %p1852_p4 = por %p1851_p3, %p1850_p2 }
  0x2c   :  { %p1853_p5 = pnand %p1852_p4, %p1846_p1 }
  0x2e   :  { %1856 = shalt.err (!%p1853_p5)
}
  0x2f   :  { %32 = dma.hbm_to_vmem [thread:$0]  %s2128_s0, 64, %s30_s24, [#allocation3]  }
  0x30   :  { %s1955_s30 = smov [#allocation7]  }
  0x31   :  { %s52_s14 = sshll.u32 %s1955_s30, 4  ;;  %s53_s14 = int_to_ptr.vmem [resolvable:$true] %s52_s14 }
  0x32   :  { %s1865_s15 = scalar_lea.vmem %s53_s14, 6144  ;;  %p1870_p7 = scmp.lt.s32.totalorder %s53_s14, %s53_s14 }
  0x33   :  { %p1866_p6 = scmp.ne.s32.totalorder %s53_s14, %s1865_s15  ;;  %p1871_p8 = scmp.lt.s32.totalorder %s1865_s15, %s1865_s15 }
  0x35   :  { %p1872_p9 = por %p1871_p8, %p1870_p7 }
  0x37   :  { %p1873_p10 = pnand %p1872_p9, %p1866_p6 }
  0x39   :  { %1876 = shalt.err (!%p1873_p10)
}
  0x3a   :  { %s1956_s9 = smov 128   ;;  %s1957_s16 = smov 8  }
  0x3b   :  { %58 = dma.hbm_to_vmem [thread:$0]  %s2131_s3, 6144, %s53_s14, [#allocation6], %s1956_s9, %s1956_s9, %s1957_s16  }
  0x3c   :  { %s1958_s21 = smov [#allocation10]   ;;  %s1959_s0 = smov [#allocation13]  }
  0x3d   :  { %s80_s1 = sshll.u32 %s1958_s21, 4  ;;  %s108_s22 = sshll.u32 %s1959_s0, 4  ;;  %s81_s1 = int_to_ptr.vmem [resolvable:$true] %s80_s1  ;;  %s109_s22 = int_to_ptr.vmem [resolvable:$true] %s108_s22 }
  0x3e   :  { %s1885_s23 = scalar_lea.vmem %s81_s1, 1024  ;;  %p1890_p12 = scmp.lt.s32.totalorder %s81_s1, %s81_s1 }
  0x3f   :  { %p1886_p11 = scmp.ne.s32.totalorder %s81_s1, %s1885_s23  ;;  %p1891_p13 = scmp.lt.s32.totalorder %s1885_s23, %s1885_s23 }
  0x41   :  { %p1892_p0 = por %p1891_p13, %p1890_p12 }
  0x43   :  { %p1893_p1 = pnand %p1892_p0, %p1886_p11 }
  0x45   :  { %1896 = shalt.err (!%p1893_p1)
}
  0x46   :  { %86 = dma.hbm_to_vmem [thread:$0]  %s2135_s7, 1024, %s81_s1, [#allocation9], %s1951_s18, %s1951_s18, %s1952_s19  }
  0x47   :  { %s1905_s3 = scalar_lea.vmem %s109_s22, 2048  ;;  %p1910_p3 = scmp.lt.s32.totalorder %s109_s22, %s109_s22 }
  0x48   :  { %p1906_p2 = scmp.ne.s32.totalorder %s109_s22, %s1905_s3  ;;  %p1911_p4 = scmp.lt.s32.totalorder %s1905_s3, %s1905_s3 }
  0x4a   :  { %p1912_p5 = por %p1911_p4, %p1910_p3 }
  0x4c   :  { %p1913_p6 = pnand %p1912_p5, %p1906_p2 }
  0x4e   :  { %1916 = shalt.err (!%p1913_p6)
}
  0x4f   :  { %114 = dma.hbm_to_vmem [thread:$0]  %s2139_s11, 2048, %s109_s22, [#allocation12], %s1956_s9, %s1956_s9, %s1957_s16  }
  0x50   :  { %1937 = dma.done.wait [#allocation3], 64  }
  0x51   :  { %1938 = vsyncadd [#allocation3], 4294967232 }
  0x52   :  { %1939 = dma.done.wait [#allocation6], 9024  }
  0x53   :  { %1940 = vsyncadd [#allocation6], 4294958272 }
  0x54   :  { %1941 = dma.done.wait [#allocation9], 3072  }
  0x55   :  { %1942 = vsyncadd [#allocation9], 4294964224 }
  0x56   :  { %1943 = dma.done.wait [#allocation12], 3072  }
  0x57   :  { %1944 = vsyncadd [#allocation12], 4294964224  ;;  %v1960_v0 = vmov 0.0   ;;  %v1961_v1 = vmov 0   ;;  %vm1962_vm0 = vmmov 0   ;;  %vm311_vm1 = vcmask 1043456  }
  0x58   :  { %1541 = vmatprep.subr.bf16.mxu1 %v1960_v0  ;;  %353 = vmatprep.mubr.bf16.mxu0 %v1961_v1  ;;  %v168_v2 = vld [vmem:[#allocation5 + $0xa8] sm:$0xff]  ;;  %v1620_v3 = vld [vmem:[#allocation5 + $0xb0] ss:$0 sps:$4 sm:$0xff]   ;;  %v1621_v6 = vld [vmem:[#allocation5 + $0x94] ss:$12 sps:$4 sm:$0xff]   ;;  %vm307_vm2 = vcmask 982016  }
  0x59   :  { %1557 = vmatprep.mubr.msk.bf16.mxu1 %vm1962_vm0, %v1960_v0  ;;  %v1388_v4 = vcombine.high %v168_v2, %v168_v2  ;;  %v1387_v5 = vcombine.low %v168_v2, %v168_v2  ;;  %v319_v7 = vsel %vm311_vm1, %v1620_v3, 0  ;;  %v1624_v9 = vld [vmem:[#allocation5 + $0x98] ss:$12 sps:$4 sm:$0xff]   ;;  %v1623_v10 = vld [vmem:[#allocation5 + $0x90] ss:$12 sps:$4 sm:$0xff]   ;;  %s1963_s14 = smov [#allocation14]  }
  0x5a   :  { %1542 = vmatpush3.bf16.msra.mxu1 %v319_v7  ;;  %v1625_v11 = vld [vmem:[#allocation5 + $0x7c] ss:$12 sps:$4 sm:$0xff]   ;;  %v1628_v12 = vld [vmem:[#allocation5 + $0x80] ss:$12 sps:$4 sm:$0xff]   ;;  %v1627_v13 = vld [vmem:[#allocation5 + $0x78] ss:$12 sps:$4 sm:$0xff]  }
  0x5b   :  { %1390 = vmatprep.subr.msk.bf16.mxu0 %vm311_vm1, %v1388_v4  ;;  %v313_v8 = vsel %vm311_vm1, %v1387_v5, 0  ;;  %1543 = vmatprep.subr.bf16.mxu1 %v1960_v0  ;;  %v1629_v14 = vld [vmem:[#allocation5 + $0x64] ss:$12 sps:$4 sm:$0xff]   ;;  %v1632_v15 = vld [vmem:[#allocation5 + $0x68] ss:$12 sps:$4 sm:$0xff]   ;;  %s1354_s15 = sshll.u32 %s1963_s14, 4  ;;  %s1355_s15 = int_to_ptr.vmem [resolvable:$true] %s1354_s15 }
  0x5c   :  { %322 = vmatpush1.bf16.msra.mxu0 %v313_v8  ;;  %v1631_v16 = vld [vmem:[#allocation5 + $0x60] ss:$12 sps:$4 sm:$0xff]   ;;  %v1636_v18 = vld [vmem:[#allocation5 + $0x50] ss:$12 sps:$4 sm:$0xff]   ;;  %v1635_v19 = vld [vmem:[#allocation5 + $0x48] ss:$12 sps:$4 sm:$0xff]   ;;  %p1922_p8 = scmp.lt.s32.totalorder %s1355_s15, %s1355_s15 }
  0x5d   :  { %323 = vmatprep.subr.bf16.mxu0 %v1621_v6  ;;  %v1633_v17 = vld [vmem:[#allocation5 + $0x4c] ss:$12 sps:$4 sm:$0xff]   ;;  %v1637_v20 = vld [vmem:[#allocation5 + $0x34] ss:$12 sps:$4 sm:$0xff]   ;;  %v1639_v22 = vld [vmem:[#allocation5 + $0x30] ss:$12 sps:$4 sm:$0xff]  }
  0x5e   :  { %1544 = vmatpush3.bf16.msra.mxu1 %v1624_v9  ;;  %v1640_v21 = vld [vmem:[#allocation5 + $0x38] ss:$12 sps:$4 sm:$0xff]   ;;  %v1641_v23 = vld [vmem:[#allocation5 + $0x1c] ss:$12 sps:$4 sm:$0xff]   ;;  %v1644_v24 = vld [vmem:[#allocation5 + $0x20] ss:$12 sps:$4 sm:$0xff]  }
  0x5f   :  { %1545 = vmatprep.subr.bf16.mxu1 %v1960_v0  ;;  %v1643_v25 = vld [vmem:[#allocation5 + $0x18] ss:$12 sps:$4 sm:$0xff]   ;;  %v1648_v27 = vld [vmem:[#allocation5 + $0x8] ss:$12 sps:$4 sm:$0xff]   ;;  %v1647_v28 = vld [vmem:[#allocation5] ss:$12 sps:$4 sm:$0xff]  }
  0x60   :  { %324 = vmatpush1.bf16.msra.mxu0 %v1623_v10  ;;  %v1645_v26 = vld [vmem:[#allocation5 + $0x4] ss:$12 sps:$4 sm:$0xff]   ;;  %v139_v31 = vld [vmem:[#allocation2] sm:$0xf]  ;;  %v1681_v34 = vld [vmem:[#allocation7 + $0x164] ss:$8 sps:$4 sm:$0xff]  }
  0x61   :  { %325 = vmatprep.subr.bf16.mxu0 %v1625_v11  ;;  %v1651_v29 = vld [vmem:[#allocation7 + $0x74] ss:$8 sps:$4 sm:$0xff]   ;;  %v1649_v32 = vld [vmem:[#allocation7 + $0x70] ss:$8 sps:$4 sm:$0xff]   ;;  %v1654_v35 = vld [vmem:[#allocation7 + $0x64] ss:$8 sps:$4 sm:$0xff]  }
  0x62   :  { %1546 = vmatpush3.bf16.msra.mxu1 %v1628_v12  ;;  %v1675_v30 = vld [vmem:[#allocation7 + $0x174] ss:$8 sps:$4 sm:$0xff]   ;;  %v1673_v33 = vld [vmem:[#allocation7 + $0x170] ss:$8 sps:$4 sm:$0xff]   ;;  %v1652_v36 = vld [vmem:[#allocation7 + $0x60] ss:$8 sps:$4 sm:$0xff]  }
  0x63   :  { %1547 = vmatprep.subr.bf16.mxu1 %v1960_v0  ;;  %v1679_v37 = vld [vmem:[#allocation7 + $0x160] ss:$8 sps:$4 sm:$0xff]   ;;  %v1687_v38 = vld [vmem:[#allocation7 + $0x154] ss:$8 sps:$4 sm:$0xff]   ;;  %v1655_v40 = vld [vmem:[#allocation7 + $0x50] ss:$8 sps:$4 sm:$0xff]  }
  0x64   :  { %326 = vmatpush1.bf16.msra.mxu0 %v1627_v13  ;;  %v1657_v39 = vld [vmem:[#allocation7 + $0x54] ss:$8 sps:$4 sm:$0xff]   ;;  %v1685_v41 = vld [vmem:[#allocation7 + $0x150] ss:$8 sps:$4 sm:$0xff]   ;;  %v1693_v42 = vld [vmem:[#allocation7 + $0x144] ss:$8 sps:$4 sm:$0xff]  }
  0x65   :  { %327 = vmatprep.subr.bf16.mxu0 %v1629_v14  ;;  %v1660_v43 = vld [vmem:[#allocation7 + $0x44] ss:$8 sps:$4 sm:$0xff]   ;;  %v1658_v44 = vld [vmem:[#allocation7 + $0x40] ss:$8 sps:$4 sm:$0xff]   ;;  %v1699_v46 = vld [vmem:[#allocation7 + $0x134] ss:$8 sps:$4 sm:$0xff]  }
  0x66   :  { %1548 = vmatpush3.bf16.msra.mxu1 %v1632_v15  ;;  %v1691_v45 = vld [vmem:[#allocation7 + $0x140] ss:$8 sps:$4 sm:$0xff]   ;;  %v1663_v47 = vld [vmem:[#allocation7 + $0x34] ss:$8 sps:$4 sm:$0xff]   ;;  %v1697_v48 = vld [vmem:[#allocation7 + $0x130] ss:$8 sps:$4 sm:$0xff]  }
  0x67   :  { %1549 = vmatprep.subr.bf16.mxu1 %v1960_v0  ;;  %v1661_v49 = vld [vmem:[#allocation7 + $0x30] ss:$8 sps:$4 sm:$0xff]   ;;  %v1705_v50 = vld [vmem:[#allocation7 + $0x124] ss:$8 sps:$4 sm:$0xff]   ;;  %v1703_v52 = vld [vmem:[#allocation7 + $0x120] ss:$8 sps:$4 sm:$0xff]  }
  0x68   :  { %328 = vmatpush1.bf16.msra.mxu0 %v1631_v16  ;;  %v1666_v51 = vld [vmem:[#allocation7 + $0x24] ss:$8 sps:$4 sm:$0xff]   ;;  %v1664_v53 = vld [vmem:[#allocation7 + $0x20] ss:$8 sps:$4 sm:$0xff]   ;;  %v1711_v54 = vld [vmem:[#allocation7 + $0x114] ss:$8 sps:$4 sm:$0xff]  }
  0x69   :  { %329 = vmatprep.subr.bf16.mxu0 %v1633_v17  ;;  %v1669_v55 = vld [vmem:[#allocation7 + $0x14] ss:$8 sps:$4 sm:$0xff]   ;;  %v1709_v56 = vld [vmem:[#allocation7 + $0x110] ss:$8 sps:$4 sm:$0xff]   ;;  %v1672_v58 = vld [vmem:[#allocation7 + $0x4] ss:$8 sps:$4 sm:$0xff]   ;;  %v172_v17 = vlaneseq }
  0x6a   :  { %1550 = vmatpush3.bf16.msra.mxu1 %v1636_v18  ;;  %v1667_v57 = vld [vmem:[#allocation7 + $0x10] ss:$8 sps:$4 sm:$0xff]   ;;  %v1670_v59 = vld [vmem:[#allocation7] ss:$8 sps:$4 sm:$0xff]   ;;  %v1678_v60 = vld [vmem:[#allocation7 + $0xf4] ss:$8 sps:$4 sm:$0xff]  }
  0x6b   :  { %1551 = vmatprep.subr.bf16.mxu1 %v1960_v0  ;;  %v1676_v61 = vld [vmem:[#allocation7 + $0xf0] ss:$8 sps:$4 sm:$0xff]   ;;  %v1684_v62 = vld [vmem:[#allocation7 + $0xe4] ss:$8 sps:$4 sm:$0xff]   ;;  %v1682_v63 = vld [vmem:[#allocation7 + $0xe0] ss:$8 sps:$4 sm:$0xff]  }
  0x6c   :  { %330 = vmatpush1.bf16.msra.mxu0 %v1635_v19  ;;  %v1690_v2 = vld [vmem:[#allocation7 + $0xd4] ss:$8 sps:$4 sm:$0xff]   ;;  %v1688_v3 = vld [vmem:[#allocation7 + $0xd0] ss:$8 sps:$4 sm:$0xff]   ;;  %v1696_v4 = vld [vmem:[#allocation7 + $0xc4] ss:$8 sps:$4 sm:$0xff]  }
  0x6d   :  { %331 = vmatprep.subr.bf16.mxu0 %v1637_v20  ;;  %v1694_v5 = vld [vmem:[#allocation7 + $0xc0] ss:$8 sps:$4 sm:$0xff]   ;;  %v1702_v6 = vld [vmem:[#allocation7 + $0xb4] ss:$8 sps:$4 sm:$0xff]   ;;  %v1700_v7 = vld [vmem:[#allocation7 + $0xb0] ss:$8 sps:$4 sm:$0xff]  }
  0x6e   :  { %1552 = vmatpush3.bf16.msra.mxu1 %v1640_v21  ;;  %v1708_v8 = vld [vmem:[#allocation7 + $0xa4] ss:$8 sps:$4 sm:$0xff]   ;;  %v1706_v9 = vld [vmem:[#allocation7 + $0xa0] ss:$8 sps:$4 sm:$0xff]   ;;  %v1714_v10 = vld [vmem:[#allocation7 + $0x94] ss:$8 sps:$4 sm:$0xff]  }
  0x6f   :  { %1553 = vmatprep.subr.bf16.mxu1 %v1960_v0  ;;  %v1717_v11 = vld [vmem:[#allocation7 + $0x104] ss:$8 sps:$4 sm:$0xff]   ;;  %v1712_v12 = vld [vmem:[#allocation7 + $0x90] ss:$8 sps:$4 sm:$0xff]   ;;  %v1715_v13 = vld [vmem:[#allocation7 + $0x100] ss:$8 sps:$4 sm:$0xff]  }
  0x70   :  { %332 = vmatpush1.bf16.msra.mxu0 %v1639_v22  ;;  %v1720_v14 = vld [vmem:[#allocation7 + $0x84] ss:$8 sps:$4 sm:$0xff]   ;;  %v1718_v15 = vld [vmem:[#allocation7 + $0x80] ss:$8 sps:$4 sm:$0xff]   ;;  %v1721_v16 = vld [vmem:[#allocation8 + $0x78] sm:$0xff]   ;;  %v173_v18 = vshrl.u32 %v172_v17, 7 }
  0x71   :  { %333 = vmatprep.subr.bf16.mxu0 %v1641_v23  ;;  %v170_v20 = vld [vmem:[%s2130_s2] sm:$0x7] }
  0x72   :  { %1554 = vmatpush3.bf16.msra.mxu1 %v1644_v24  ;;  %v182_v19 = vsub.s32 2, %v173_v18  ;;  %v2080_v21 = vsub.s32 0, %v173_v18  ;;  %v2082_v22 = vsub.s32 1, %v173_v18 }
  0x73   :  { %1555 = vmatprep.subr.bf16.mxu1 %v1960_v0 }
  0x74   :  { %334 = vmatpush1.bf16.msra.mxu0 %v1643_v25  ;;  %v183_v23 = vrot.slane %v170_v20, %v182_v19  ;;  %v175_v24 = vrot.slane %v170_v20, %v2080_v21 }
  0x75   :  { %335 = vmatprep.subr.bf16.mxu0 %v1645_v26  ;;  %v179_v26 = vrot.slane %v170_v20, %v2082_v22  ;;  %v1742_v20 = vld [vmem:[#allocation10 + $0x10] sm:$0xff]  }
  0x76   :  { %1556 = vmatpush3.bf16.msra.mxu1 %v1648_v27 }
  0x77   :  { %749 = vmatprep.subr.bf16.mxu1 %v1675_v30 }
  0x78   :  { %336 = vmatpush1.bf16.msra.mxu0 %v1647_v28 }
  0x79   :  { %708 = vmatprep.subr.bf16.mxu0 %v1651_v29  ;;  %1558 = vmatmul.mubr.msk.bf16.vlgmr.msra.gmra.mxu1 %vm307_vm2, %v139_v31 }
  0x7a   :  { %750 = vmatpush1.bf16.msra.mxu1 %v1673_v33  ;;  %781 = vmatprep.mubr.bf16.mxu1 %v1961_v1 }
  0x7b   :  { %1391 = vmatmul.mubr.msk.bf16.vlgmr.msra.gmra.mxu0 %vm307_vm2, %v139_v31  ;;  %751 = vmatprep.subr.bf16.mxu1 %v1681_v34 }
  0x7c   :  { %709 = vmatpush1.bf16.msra.mxu0 %v1649_v32 }
  0x7d   :  { %710 = vmatprep.subr.bf16.mxu0 %v1654_v35  ;;  %v1722_v35 = vld [vmem:[#allocation8 + $0x38] sm:$0xff]  }
  0x7e   :  { %752 = vmatpush1.bf16.msra.mxu1 %v1679_v37 }
  0x7f   :  { %753 = vmatprep.subr.bf16.mxu1 %v1687_v38 }
  0x80   :  { %711 = vmatpush1.bf16.msra.mxu0 %v1652_v36 }
  0x81   :  { %712 = vmatprep.subr.bf16.mxu0 %v1657_v39  ;;  %v1723_v39 = vld [vmem:[#allocation8 + $0x70] sm:$0xff]  }
  0x82   :  { %754 = vmatpush1.bf16.msra.mxu1 %v1685_v41 }
  0x83   :  { %755 = vmatprep.subr.bf16.mxu1 %v1693_v42 }
  0x84   :  { %713 = vmatpush1.bf16.msra.mxu0 %v1655_v40 }
  0x85   :  { %714 = vmatprep.subr.bf16.mxu0 %v1660_v43 }
  0x86   :  { %756 = vmatpush1.bf16.msra.mxu1 %v1691_v45 }
  0x87   :  { %757 = vmatprep.subr.bf16.mxu1 %v1699_v46  ;;  %v1725_v46 = vld [vmem:[#allocation8 + $0x68] sm:$0xff]  }
  0x88   :  { %715 = vmatpush1.bf16.msra.mxu0 %v1658_v44  ;;  %v1724_v44 = vld [vmem:[#allocation8 + $0x30] sm:$0xff]  }
  0x89   :  { %716 = vmatprep.subr.bf16.mxu0 %v1663_v47  ;;  %v1726_v47 = vld [vmem:[#allocation8 + $0x28] sm:$0xff]  }
  0x8a   :  { %758 = vmatpush1.bf16.msra.mxu1 %v1697_v48  ;;  %v1727_v48 = vld [vmem:[#allocation8 + $0x60] sm:$0xff]  }
  0x8b   :  { %759 = vmatprep.subr.bf16.mxu1 %v1705_v50  ;;  %v1729_v50 = vld [vmem:[#allocation8 + $0x58] sm:$0xff]  }
  0x8c   :  { %717 = vmatpush1.bf16.msra.mxu0 %v1661_v49  ;;  %v1728_v49 = vld [vmem:[#allocation8 + $0x20] sm:$0xff]  }
  0x8d   :  { %718 = vmatprep.subr.bf16.mxu0 %v1666_v51  ;;  %v1730_v51 = vld [vmem:[#allocation8 + $0x18] sm:$0xff]  }
  0x8e   :  { %760 = vmatpush1.bf16.msra.mxu1 %v1703_v52  ;;  %v1731_v52 = vld [vmem:[#allocation8 + $0x50] sm:$0xff]  }
  0x8f   :  { %761 = vmatprep.subr.bf16.mxu1 %v1711_v54  ;;  %v1733_v54 = vld [vmem:[#allocation8 + $0x48] sm:$0xff]  }
  0x90   :  { %719 = vmatpush1.bf16.msra.mxu0 %v1664_v53  ;;  %v1732_v53 = vld [vmem:[#allocation8 + $0x10] sm:$0xff]  }
  0x91   :  { %720 = vmatprep.subr.bf16.mxu0 %v1669_v55  ;;  %v1734_v55 = vld [vmem:[#allocation8 + $0x8] sm:$0xff]  }
  0x92   :  { %762 = vmatpush1.bf16.msra.mxu1 %v1709_v56  ;;  %v1735_v56 = vld [vmem:[#allocation8 + $0x40] sm:$0xff]  }
  0x93   :  { %763 = vmatprep.subr.bf16.mxu1 %v1717_v11 }
  0x94   :  { %721 = vmatpush1.bf16.msra.mxu0 %v1667_v57  ;;  %v1736_v57 = vld [vmem:[#allocation8] sm:$0xff]  }
  0x95   :  { %722 = vmatprep.subr.bf16.mxu0 %v1672_v58  ;;  %v1737_v58 = vld [vmem:[#allocation10 + $0x38] sm:$0xff]  }
  0x96   :  { %764 = vmatpush1.bf16.msra.mxu1 %v1715_v13 }
  0x97   :  { %1501 = vmatprep.subr.bf16.mxu1 %v1721_v16 }
  0x98   :  { %723 = vmatpush1.bf16.msra.mxu0 %v1670_v59  ;;  %v1738_v59 = vld [vmem:[#allocation10 + $0x30] sm:$0xff]  }
  0x99   :  { %724 = vmatprep.subr.bf16.mxu0 %v1678_v60  ;;  %v1739_v60 = vld [vmem:[#allocation10 + $0x28] sm:$0xff]  }
  0x9c   :  { %725 = vmatpush2.bf16.msra.mxu0 %v1676_v61  ;;  %v1740_v61 = vld [vmem:[#allocation10 + $0x20] sm:$0xff]  }
  0x9d   :  { %726 = vmatprep.subr.bf16.mxu0 %v1684_v62  ;;  %v1741_v62 = vld [vmem:[#allocation10 + $0x18] sm:$0xff]  }
  0xa0   :  { %727 = vmatpush2.bf16.msra.mxu0 %v1682_v63  ;;  %v456_v63 = vld [vmem:[%s2132_s4] sm:$0x3] }
  0xa1   :  { %728 = vmatprep.subr.bf16.mxu0 %v1690_v2 }
  0xa4   :  { %729 = vmatpush2.bf16.msra.mxu0 %v1688_v3  ;;  %v461_v3 = vrot.slane %v456_v63, %v2080_v21 }
  0xa5   :  { %730 = vmatprep.subr.bf16.mxu0 %v1696_v4 }
  0xa8   :  { %731 = vmatpush2.bf16.msra.mxu0 %v1694_v5  ;;  %v465_v5 = vrot.slane %v456_v63, %v2082_v22  ;;  %v1774_v63 = vld [vmem:[#allocation13] ss:$8 sps:$4 sm:$0xff]  }
  0xa9   :  { %732 = vmatprep.subr.bf16.mxu0 %v1702_v6 }
  0xac   :  { %733 = vmatpush2.bf16.msra.mxu0 %v1700_v7 }
  0xad   :  { %734 = vmatprep.subr.bf16.mxu0 %v1708_v8 }
  0xb0   :  { %735 = vmatpush2.bf16.msra.mxu0 %v1706_v9 }
  0xb1   :  { %736 = vmatprep.subr.bf16.mxu0 %v1714_v10 }
  0xb4   :  { %737 = vmatpush2.bf16.msra.mxu0 %v1712_v12 }
  0xb5   :  { %738 = vmatprep.subr.bf16.mxu0 %v1720_v14 }
  0xb8   :  { %739 = vmatpush2.bf16.msra.mxu0 %v1718_v15 }
  0xb9   :  { %1561 = vmatprep.subr.bf16.mxu0 %v1960_v0 }
 0x139   :  { %v396_v25 = vpop.f32.mrf.mxu1 }
 0x13a   :  { %v397_v28 = vadd.f32 %v396_v25, %v183_v23  ;;  %v1743_v23 = vld [vmem:[#allocation10 + $0x8] sm:$0xff]   ;;  %v1745_v25 = vld [vmem:[#allocation11 + $0x38] sm:$0xff]  }
 0x13b   :  { %v355_v27 = vpop.f32.mrf.mxu0  ;;  %v1559_v30 = vpop.f32.mrf.mxu1 }
 0x13c   :  { %v356_v29 = vadd.f32 %v355_v27, %v175_v24  ;;  %v404_v31 = vmax.f32 %v397_v28, 0.0  ;;  %v1744_v24 = vld [vmem:[#allocation10] sm:$0xff]   ;;  %v1747_v27 = vld [vmem:[#allocation11 + $0x28] sm:$0xff]   ;;  %v1750_v30 = vld [vmem:[#allocation11 + $0x10] sm:$0xff]  }
 0x13d   :  { %v357_v32 = vpop.f32.mrf.mxu0  ;;  %v399_v34 = vpop.f32.mrf.mxu1  ;;  %v1748_v28 = vld [vmem:[#allocation11 + $0x20] sm:$0xff]  }
 0x13e   :  { %v358_v33 = vadd.f32 %v357_v32, %v179_v26  ;;  %v402_v36 = vmax.f32 %v356_v29, 0.0  ;;  %v407_v37 = vpack.c.bf16 %v404_v31, %v404_v31  ;;  %v1746_v26 = vld [vmem:[#allocation11 + $0x30] sm:$0xff]   ;;  %v1749_v29 = vld [vmem:[#allocation11 + $0x18] sm:$0xff]   ;;  %v1441_v32 = vld [vmem:[%s2134_s6] ss:$0 sm:$0xff] }
 0x13f   :  { %v359_v38 = vpop.f32.mrf.mxu0  ;;  %v1560_v41 = vpop.f32.mrf.mxu1 }
 0x140   :  { %v403_v40 = vmax.f32 %v358_v33, 0.0  ;;  %782 = vmatmul.mubr.bf16.vlgmr.msra.gmra.mxu1 %v407_v37  ;;  %v405_v45 = vpack.c.bf16 %v402_v36, %v402_v36  ;;  %v1752_v41 = vld [vmem:[#allocation11] sm:$0xff]  }
 0x141   :  { %v360_v42 = vpop.f32.mrf.mxu0  ;;  %1502 = vmatpush3.bf16.msra.mxu1 %v1722_v35 }
 0x142   :  { %v406_v43 = vpack.c.bf16 %v403_v40, %v403_v40  ;;  %1503 = vmatprep.subr.bf16.mxu1 %v1723_v39  ;;  %v1751_v40 = vld [vmem:[#allocation11 + $0x8] sm:$0xff]   ;;  %v1753_v42 = vld [vmem:[#allocation13 + $0x70] ss:$8 sps:$4 sm:$0xff]  }
 0x144   :  { %740 = vmatprep.mubr.bf16.mxu0 %v406_v43  ;;  %v1755_v43 = vld [vmem:[#allocation13 + $0x74] ss:$8 sps:$4 sm:$0xff]  }
 0x145   :  { %741 = vmatmul.mubr.bf16.vlgmr.msra.gmra.mxu0 %v405_v45  ;;  %1504 = vmatpush3.bf16.msra.mxu1 %v1724_v44  ;;  %v1758_v44 = vld [vmem:[#allocation13 + $0x64] ss:$8 sps:$4 sm:$0xff]   ;;  %v1756_v45 = vld [vmem:[#allocation13 + $0x60] ss:$8 sps:$4 sm:$0xff]  }
 0x146   :  { %1577 = vmatprep.mubr.msk.bf16.mxu0 %vm1962_vm0, %v1960_v0  ;;  %1505 = vmatprep.subr.bf16.mxu1 %v1725_v46  ;;  %v1761_v46 = vld [vmem:[#allocation13 + $0x54] ss:$8 sps:$4 sm:$0xff]  }
 0x147   :  { %1562 = vmatpush3.bf16.msra.mxu0 %v1737_v58 }
 0x148   :  { %1563 = vmatprep.subr.bf16.mxu0 %v1960_v0 }
 0x149   :  { %1506 = vmatpush3.bf16.msra.mxu1 %v1726_v47  ;;  %v1759_v47 = vld [vmem:[#allocation13 + $0x50] ss:$8 sps:$4 sm:$0xff]  }
 0x14a   :  { %1507 = vmatprep.subr.bf16.mxu1 %v1727_v48  ;;  %v1764_v48 = vld [vmem:[#allocation13 + $0x44] ss:$8 sps:$4 sm:$0xff]  }
 0x14b   :  { %1564 = vmatpush3.bf16.msra.mxu0 %v1738_v59 }
 0x14c   :  { %1565 = vmatprep.subr.bf16.mxu0 %v1960_v0 }
 0x14d   :  { %1508 = vmatpush3.bf16.msra.mxu1 %v1728_v49  ;;  %v1767_v49 = vld [vmem:[#allocation13 + $0x34] ss:$8 sps:$4 sm:$0xff]  }
 0x14e   :  { %1509 = vmatprep.subr.bf16.mxu1 %v1729_v50  ;;  %v1770_v50 = vld [vmem:[#allocation13 + $0x24] ss:$8 sps:$4 sm:$0xff]  }
 0x14f   :  { %1566 = vmatpush3.bf16.msra.mxu0 %v1739_v60 }
 0x150   :  { %1567 = vmatprep.subr.bf16.mxu0 %v1960_v0 }
 0x151   :  { %1510 = vmatpush3.bf16.msra.mxu1 %v1730_v51  ;;  %v1768_v51 = vld [vmem:[#allocation13 + $0x20] ss:$8 sps:$4 sm:$0xff]  }
 0x152   :  { %1511 = vmatprep.subr.bf16.mxu1 %v1731_v52  ;;  %v1773_v52 = vld [vmem:[#allocation13 + $0x14] ss:$8 sps:$4 sm:$0xff]  }
 0x153   :  { %1568 = vmatpush3.bf16.msra.mxu0 %v1740_v61 }
 0x154   :  { %1569 = vmatprep.subr.bf16.mxu0 %v1960_v0 }
 0x155   :  { %1512 = vmatpush3.bf16.msra.mxu1 %v1732_v53  ;;  %v1771_v53 = vld [vmem:[#allocation13 + $0x10] ss:$8 sps:$4 sm:$0xff]  }
 0x156   :  { %1513 = vmatprep.subr.bf16.mxu1 %v1733_v54  ;;  %v1458_v54 = vld [vmem:[%s2136_s8] ss:$0 sm:$0xff] }
 0x157   :  { %1570 = vmatpush3.bf16.msra.mxu0 %v1741_v62  ;;  %v1776_v62 = vld [vmem:[#allocation13 + $0x4] ss:$8 sps:$4 sm:$0xff]  }
 0x158   :  { %1571 = vmatprep.subr.bf16.mxu0 %v1960_v0 }
 0x159   :  { %1514 = vmatpush3.bf16.msra.mxu1 %v1734_v55 }
 0x15a   :  { %1515 = vmatprep.subr.bf16.mxu1 %v1735_v56 }
 0x15b   :  { %1572 = vmatpush3.bf16.msra.mxu0 %v1742_v20 }
 0x15c   :  { %1573 = vmatprep.subr.bf16.mxu0 %v1960_v0 }
 0x15d   :  { %1516 = vmatpush3.bf16.msra.mxu1 %v1736_v57 }
 0x15e   :  { %1581 = vmatprep.subr.bf16.mxu1 %v1960_v0 }
 0x15f   :  { %1574 = vmatpush3.bf16.msra.mxu0 %v1743_v23 }
 0x160   :  { %1575 = vmatprep.subr.bf16.mxu0 %v1960_v0 }
 0x163   :  { %1576 = vmatpush3.bf16.msra.mxu0 %v1744_v24 }
 0x164   :  { %1305 = vmatprep.subr.bf16.mxu0 %v1755_v43 }
 0x200   :  { %v783_v2 = vpop.f32.mrf.mxu1 }
 0x202   :  { %v785_v4 = vpop.f32.mrf.mxu1 }
 0x204   :  { %v787_v7 = vpop.f32.mrf.mxu1 }
 0x205   :  { %v742_v6 = vpop.f32.mrf.mxu0 }
 0x206   :  { %v743_v8 = vadd.f32 %v742_v6, %v461_v3  ;;  %v788_v10 = vpop.f32.mrf.mxu1 }
 0x207   :  { %v744_v9 = vpop.f32.mrf.mxu0  ;;  %v1213_v10 = vld [vmem:[%s2140_s12] sm:$0x3] }
 0x208   :  { %v784_v11 = vadd.f32 %v783_v2, %v743_v8  ;;  %v745_v12 = vadd.f32 %v744_v9, %v465_v5  ;;  %v1467_v2 = vld [vmem:[%s2138_s10] ss:$0 sm:$0xff]  ;;  %s1917_s10 = scalar_lea.vmem %s1355_s15, 256 }
 0x209   :  { %v746_v13 = vpop.f32.mrf.mxu0  ;;  %p1918_p7 = scmp.ne.s32.totalorder %s1355_s15, %s1917_s10  ;;  %p1923_p9 = scmp.lt.s32.totalorder %s1917_s10, %s1917_s10 }
 0x20a   :  { %v786_v14 = vadd.f32 %v785_v4, %v745_v12  ;;  %v790_v15 = vmax.f32 %v784_v11, 0.0  ;;  %v1218_v11 = vrot.slane %v1213_v10, %v2080_v21  ;;  %v1222_v12 = vrot.slane %v1213_v10, %v2082_v22 }
 0x20b   :  { %v747_v16 = vpop.f32.mrf.mxu0  ;;  %p1924_p10 = por %p1923_p9, %p1922_p8 }
 0x20c   :  { %v791_v17 = vmax.f32 %v786_v14, 0.0  ;;  %v792_v19 = vpack.c.bf16 %v790_v15, %v790_v15 }
 0x20d   :  { %p1925_p11 = pnand %p1924_p10, %p1918_p7 }
 0x20e   :  { %v793_v18 = vpack.c.bf16 %v791_v17, %v791_v17 }
 0x210   :  { %961 = vmatprep.mubr.bf16.mxu1 %v793_v18 }
 0x211   :  { %962 = vmatmul.mubr.bf16.vlgmr.msra.gmra.mxu1 %v792_v19 }
 0x212   :  { %1597 = vmatprep.mubr.msk.bf16.mxu1 %vm1962_vm0, %v1960_v0  ;;  %1582 = vmatpush3.bf16.msra.mxu1 %v1745_v25 }
 0x213   :  { %1583 = vmatprep.subr.bf16.mxu1 %v1960_v0 }
 0x216   :  { %1584 = vmatpush3.bf16.msra.mxu1 %v1746_v26 }
 0x217   :  { %1585 = vmatprep.subr.bf16.mxu1 %v1960_v0 }
 0x21a   :  { %1586 = vmatpush3.bf16.msra.mxu1 %v1747_v27 }
 0x21b   :  { %1587 = vmatprep.subr.bf16.mxu1 %v1960_v0 }
 0x21e   :  { %1588 = vmatpush3.bf16.msra.mxu1 %v1748_v28 }
 0x21f   :  { %1589 = vmatprep.subr.bf16.mxu1 %v1960_v0 }
 0x222   :  { %1590 = vmatpush3.bf16.msra.mxu1 %v1749_v29 }
 0x223   :  { %1591 = vmatprep.subr.bf16.mxu1 %v1960_v0 }
 0x226   :  { %1592 = vmatpush3.bf16.msra.mxu1 %v1750_v30 }
 0x227   :  { %1593 = vmatprep.subr.bf16.mxu1 %v1960_v0 }
 0x22a   :  { %1594 = vmatpush3.bf16.msra.mxu1 %v1751_v40 }
 0x22b   :  { %1595 = vmatprep.subr.bf16.mxu1 %v1960_v0  ;;  %v1765_v0 = vld [vmem:[#allocation13 + $0x30] ss:$8 sps:$4 sm:$0xff]  }
 0x22e   :  { %1596 = vmatpush3.bf16.msra.mxu1 %v1752_v41 }
 0x2d1   :  { %v1517_v31 = vpop.f32.mrf.mxu1 }
 0x2d3   :  { %v1518_v33 = vpop.f32.mrf.mxu1 }
 0x2d4   :  { %v1519_v34 = vadd.f32 %v1518_v33, %v1517_v31 }
 0x2d5   :  { %v1520_v35 = vpop.f32.mrf.mxu1 }
 0x2d6   :  { %v964_v36 = vadd.f32 %v1519_v34, %v1441_v32 }
 0x2d7   :  { %v1521_v37 = vpop.f32.mrf.mxu1 }
 0x2d8   :  { %v969_v38 = vmax.f32 %v964_v36, 0.0 }
 0x2da   :  { %v970_v39 = vpack.c.bf16 %v969_v38, %v969_v38 }
 0x2dc   :  { %1578 = vmatmul.mubr.bf16.vlgmr.msra.gmra.mxu0 %v970_v39 }
 0x2dd   :  { %1337 = vmatprep.mubr.bf16.mxu0 %v1961_v1  ;;  %1306 = vmatpush1.bf16.msra.mxu0 %v1753_v42  ;;  %v1762_v1 = vld [vmem:[#allocation13 + $0x40] ss:$8 sps:$4 sm:$0xff]  }
 0x2de   :  { %1307 = vmatprep.subr.bf16.mxu0 %v1758_v44 }
 0x2e1   :  { %1308 = vmatpush1.bf16.msra.mxu0 %v1756_v45 }
 0x2e2   :  { %1309 = vmatprep.subr.bf16.mxu0 %v1761_v46 }
 0x2e5   :  { %1310 = vmatpush1.bf16.msra.mxu0 %v1759_v47 }
 0x2e6   :  { %1311 = vmatprep.subr.bf16.mxu0 %v1764_v48 }
 0x2e9   :  { %1312 = vmatpush1.bf16.msra.mxu0 %v1762_v1 }
 0x2ea   :  { %1313 = vmatprep.subr.bf16.mxu0 %v1767_v49 }
 0x2ed   :  { %1314 = vmatpush1.bf16.msra.mxu0 %v1765_v0 }
 0x2ee   :  { %1315 = vmatprep.subr.bf16.mxu0 %v1770_v50 }
 0x2f1   :  { %1316 = vmatpush1.bf16.msra.mxu0 %v1768_v51 }
 0x2f2   :  { %1317 = vmatprep.subr.bf16.mxu0 %v1773_v52 }
 0x2f5   :  { %1318 = vmatpush1.bf16.msra.mxu0 %v1771_v53 }
 0x2f6   :  { %1319 = vmatprep.subr.bf16.mxu0 %v1776_v62 }
 0x2f9   :  { %1320 = vmatpush1.bf16.msra.mxu0 %v1774_v63 }
 0x39c   :  { %v1076_v55 = vpop.f32.mrf.mxu0 }
 0x39d   :  { %v1077_v56 = vadd.f32 %v1458_v54, %v1076_v55 }
 0x39e   :  { %v1579_v57 = vpop.f32.mrf.mxu0 }
 0x39f   :  { %v1082_v58 = vmax.f32 %v1077_v56, 0.0 }
 0x3a0   :  { %v1079_v59 = vpop.f32.mrf.mxu0 }
 0x3a1   :  { %v1083_v60 = vpack.c.bf16 %v1082_v58, %v1082_v58 }
 0x3a2   :  { %v1580_v61 = vpop.f32.mrf.mxu0 }
 0x3a3   :  { %1598 = vmatmul.mubr.bf16.vlgmr.msra.gmra.mxu1 %v1083_v60 }
 0x463   :  { %v1189_v3 = vpop.f32.mrf.mxu1 }
 0x464   :  { %v1190_v4 = vadd.f32 %v1467_v2, %v1189_v3 }
 0x465   :  { %v1599_v5 = vpop.f32.mrf.mxu1 }
 0x466   :  { %v1195_v6 = vmax.f32 %v1190_v4, 0.0 }
 0x467   :  { %v1192_v7 = vpop.f32.mrf.mxu1 }
 0x468   :  { %v1196_v8 = vpack.c.bf16 %v1195_v6, %v1195_v6 }
 0x469   :  { %v1600_v9 = vpop.f32.mrf.mxu1 }
 0x46a   :  { %1338 = vmatmul.mubr.bf16.vlgmr.msra.gmra.mxu0 %v1196_v8 }
 0x52a   :  { %v1339_v13 = vpop.f32.mrf.mxu0 }
 0x52b   :  { %v1340_v14 = vadd.f32 %v1339_v13, %v1218_v11 }
 0x52c   :  { %v1341_v15 = vpop.f32.mrf.mxu0 }
 0x52d   :  { %1346 = vst [vmem:[#allocation14] sm:$0xff] %v1340_v14  ;;  %v1342_v16 = vadd.f32 %v1341_v15, %v1222_v12 }
 0x52e   :  { %v1343_v17 = vpop.f32.mrf.mxu0 }
 0x52f   :  { %1347 = vst [vmem:[#allocation14 + $0x8] sm:$0xff] %v1342_v16 }
 0x530   :  { %v1344_v18 = vpop.f32.mrf.mxu0 }
 0x531   :  { %1928 = shalt.err (!%p1925_p11)
}
 0x532   :  { %1357 = dma.vmem_to_hbm [thread:$0]  %s1355_s15, 256, %s2141_s13, [#allocation4]  }
 0x533   :  { %1945 = dma.done.wait [#allocation4], 256  }
 0x534   :  { %1946 = vsyncadd [#allocation4], 4294967040 }
 0x535   :  { %1361 = vsyncpa [#allocation3], 1 }
 0x536   :  { %1362 = vsyncpa [#allocation6], 1 }
 0x537   :  { %1363 = vsyncpa [#allocation9], 1 }
 0x538   :  { %1364 = vsyncpa [#allocation12], 1 }
 0x539   :  { %1365 = vsyncpa [#allocation4], 1 }

</bundles_post_ra>
